<compile_context>
chip_gen: v5e
topology: v5e:2x2
jax: 0.10.0
libtpu: 0.0.40
codegen_flags: <defaults>
</compile_context>

<pallas_src>
import jax
import jax.numpy as jnp
from jax.experimental import pallas as pl
from jax.experimental.pallas import tpu as pltpu


def _round_up(a: int, m: int) -> int:
    return (a + m - 1) // m * m


def _default_compute_dtype():
    """bf16 activations on chips with a bf16 VPU/EUP (v6e / v7x), else f32."""
    try:
        kind = jax.devices()[0].device_kind.lower()
    except Exception:  # pragma: no cover - defensive
        return jnp.float32
    if "v6" in kind or "v7" in kind:
        return jnp.bfloat16
    return jnp.float32


def _make_pinn_kernel(n_sigmas: int, n_hidden: int, d_in: int, compute_dtype):
    """Kernel closure for a fixed sigma count / hidden depth / compute dtype.

    Transposed (batch-on-lanes) layout: every activation is (features, tile).
    """

    def kernel(*refs):
        # refs = [xT, bT_s * n_sigmas, w1cT, w1sT, b1T,
        #         (whT, bhT) * (n_hidden-1), wdT_s * n_sigmas, bdT, out]
        x_ref = refs[0]
        i = 1
        bT_refs = refs[i:i + n_sigmas]; i += n_sigmas
        w1c_ref, w1s_ref, b1_ref = refs[i:i + 3]; i += 3
        rest = refs[i:i + 2 * (n_hidden - 1)]; i += 2 * (n_hidden - 1)
        wd_refs = refs[i:i + n_sigmas]; i += n_sigmas
        bd_ref = refs[i]
        out_ref = refs[i + 1]

        x = x_ref[...].astype(jnp.float32)            # (d_in, tile)

        # Load the small resident weights once (outside the sigma loop).
        w1c = w1c_ref[...]                            # (h1, half)   compute dt
        w1s = w1s_ref[...]                            # (h1, half)   compute dt
        b1 = b1_ref[...]                              # (h1, 1)      f32
        rest_w = [rest[2 * h][...] for h in range(n_hidden - 1)]
        rest_b = [rest[2 * h + 1][...] for h in range(n_hidden - 1)]
        bd = bd_ref[...]                              # (out_dim, 1) f32

        acc = None
        for s in range(n_sigmas):
            bT = bT_refs[s][...]                      # (half, d_in) f32
            # --- Fourier projection on the VPU (K = d_in tiny; skip the MXU).
            # Phase stays f32: bf16 phases would corrupt cos/sin at sigma=10.
            xb = bT[:, 0:1] * x[0:1, :]               # (half, tile)
            for d in range(1, d_in):
                xb = xb + bT[:, d:d + 1] * x[d:d + 1, :]
            c = jnp.cos(xb).astype(compute_dtype)     # bounded -> cheap cast
            sn = jnp.sin(xb).astype(compute_dtype)

            # --- first hidden layer: split matmul (no [cos, sin] concat) ---
            z = (jnp.dot(w1c, c, preferred_element_type=jnp.float32)
                 + jnp.dot(w1s, sn, preferred_element_type=jnp.float32)
                 + b1)
            y = jnp.tanh(z.astype(compute_dtype))     # (h1, tile)

            # --- remaining hidden layers ---
            for h in range(n_hidden - 1):
                z = jnp.dot(rest_w[h], y, preferred_element_type=jnp.float32) \
                    + rest_b[h]
                y = jnp.tanh(z.astype(compute_dtype))

            # --- this sigma's slice of the final dense (no feature concat) ---
            part = jnp.dot(wd_refs[s][...], y, preferred_element_type=jnp.float32)
            acc = part if acc is None else acc + part

        out_ref[...] = (acc + bd).astype(out_ref.dtype)   # (out_dim, tile)

    return kernel


def pinn_forward(x, b_stack, hidden_params, dense_w, dense_b, *,
                 tile_n=4096, compute_dtype=None):
    """PINN forward pass in one batch-tiled, batch-on-lanes Pallas kernel.

    x:             (N, D_in) float32
    b_stack:       (n_sigmas, D_in, layer_sizes[1]//2) float32
    hidden_params: list of (W, bias) with W (in, out), bias (1, out)
    dense_w:       (n_sigmas * layer_sizes[-2], layer_sizes[-1])
    dense_b:       (1, layer_sizes[-1])
    """
    n_sigmas, d_in, half = b_stack.shape
    n_hidden = len(hidden_params)
    assert n_hidden >= 1, "need at least one hidden Linear"
    out_dim = dense_w.shape[1]
    hid_last = hidden_params[-1][0].shape[1]
    n = x.shape[0]

    if compute_dtype is None:
        compute_dtype = _default_compute_dtype()
    cd = compute_dtype

    # Batch lives on the lane axis -> tile / pad in multiples of 128.
    tile = min(int(tile_n), _round_up(max(n, 1), 128))
    tile = _round_up(tile, 128)
    n_pad = _round_up(n, tile)
    # Megacore: give both TensorCores work when the batch is big enough.
    if n_pad // tile < 2 and n > 2 * 128:
        tile = _round_up((n + 1) // 2, 128)
        n_pad = _round_up(n, tile)
    grid = (n_pad // tile,)

    # Wrapper-side layout plumbing (free): transpose everything so the batch
    # axis is last (lanes) and pre-slice weights so the kernel never concats.
    xT = x.T.astype(jnp.float32)                               # (d_in, N)
    if n_pad != n:
        xT = jnp.pad(xT, ((0, 0), (0, n_pad - n)))

    bT_list = [b_stack[s].T.astype(jnp.float32) for s in range(n_sigmas)]
    w1, b1 = hidden_params[0]
    w1cT = w1[:half].T.astype(cd)                              # (h1, half)
    w1sT = w1[half:].T.astype(cd)                              # (h1, half)
    b1T = b1.reshape(-1, 1).astype(jnp.float32)                # (h1, 1)
    restT = []
    for w, bias in hidden_params[1:]:
        restT.append(w.T.astype(cd))                           # (out, in)
        restT.append(bias.reshape(-1, 1).astype(jnp.float32))  # (out, 1)
    wdT_list = [dense_w[s * hid_last:(s + 1) * hid_last].T.astype(cd)
                for s in range(n_sigmas)]                      # (out_dim, hid)
    bdT = dense_b.reshape(-1, 1).astype(jnp.float32)           # (out_dim, 1)

    operands = [xT, *bT_list, w1cT, w1sT, b1T, *restT, *wdT_list, bdT]

    # x / out tiled along the lane (batch) axis; every weight stays resident.
    in_specs = [pl.BlockSpec((d_in, tile), lambda i: (0, i))]
    in_specs += [pl.BlockSpec(a.shape, lambda i: (0, 0)) for a in operands[1:]]
    out_specs = pl.BlockSpec((out_dim, tile), lambda i: (0, i))

    # Advisory cost estimate for the surrounding XLA graph.
    hid_sizes = [w.shape[1] for w, _ in hidden_params]
    flops_row = 2 * n_sigmas * (
        d_in * half
        + 2 * half * hid_sizes[0]
        + sum(a * b for a, b in zip(hid_sizes[:-1], hid_sizes[1:]))
        + hid_last * out_dim)
    transc_row = n_sigmas * (2 * half + sum(hid_sizes))
    weight_bytes = sum(int(a.size) * a.dtype.itemsize for a in operands[1:])
    cost = pl.CostEstimate(
        flops=int(flops_row) * int(n_pad),
        transcendentals=int(transc_row) * int(n_pad),
        bytes_accessed=int(4 * n_pad * (d_in + out_dim) + weight_bytes),
    )

    outT = pl.pallas_call(
        _make_pinn_kernel(n_sigmas, n_hidden, d_in, cd),
        out_shape=jax.ShapeDtypeStruct((out_dim, n_pad), jnp.float32),
        grid=grid,
        in_specs=in_specs,
        out_specs=out_specs,
        compiler_params=pltpu.CompilerParams(
            dimension_semantics=("parallel",)),
        cost_estimate=cost,
    )(*operands)
    return outT[:, :n].T                                        # (N, out_dim)


def pinn_forward_ref(x, b_stack, hidden_params, dense_w, dense_b):
    """Pure-JAX f32 reference mirroring the PyTorch module's forward()."""
    feats = []
    for s in range(b_stack.shape[0]):
        xb = x @ b_stack[s]
        y = jnp.concatenate([jnp.cos(xb), jnp.sin(xb)], axis=1)
        for w, bias in hidden_params:
            y = jnp.tanh(y @ w + bias)
        feats.append(y)
    feat = jnp.concatenate(feats, axis=1)
    return feat @ dense_w + dense_b


if __name__ == "__main__":
    # Config consistent with the module:
    #   layer_sizes = [2, 64, 32, 32, 8]  (layer_sizes[1] even, as asserted)
    #   sigmas      = [1.0, 10.0], dropout_rate = 0 (inference path)
    layer_sizes = [2, 64, 32, 32, 8]
    sigmas = [1.0, 10.0]
    batch = 8

    key = jax.random.PRNGKey(0)
    keys = jax.random.split(key, 16)

    d_in = layer_sizes[0]
    half = layer_sizes[1] // 2

    # Fourier bases: b_i ~ N(0, sigma^2), shape (D_in, layer_sizes[1]//2)
    b_stack = jnp.stack(
        [
            sigma * jax.random.normal(keys[i], (d_in, half), dtype=jnp.float32)
            for i, sigma in enumerate(sigmas)
        ]
    )

    # Hidden linears: Linear(layer_sizes[i-1], layer_sizes[i]) for i in 2..len-2
    hidden_params = []
    kidx = 4
    for i in range(2, len(layer_sizes) - 1):
        fan_in, fan_out = layer_sizes[i - 1], layer_sizes[i]
        bound = 1.0 / jnp.sqrt(fan_in)
        w = jax.random.uniform(
            keys[kidx], (fan_in, fan_out), minval=-bound, maxval=bound,
            dtype=jnp.float32,
        )
        bias = jax.random.uniform(
            keys[kidx + 1], (1, fan_out), minval=-bound, maxval=bound,
            dtype=jnp.float32,
        )
        hidden_params.append((w, bias))
        kidx += 2

    # Final dense: Linear(layer_sizes[-2] * len(sigmas), layer_sizes[-1])
    fan_in = layer_sizes[-2] * len(sigmas)
    fan_out = layer_sizes[-1]
    bound = 1.0 / jnp.sqrt(fan_in)
    dense_w = jax.random.uniform(
        keys[kidx], (fan_in, fan_out), minval=-bound, maxval=bound,
        dtype=jnp.float32,
    )
    dense_b = jax.random.uniform(
        keys[kidx + 1], (1, fan_out), minval=-bound, maxval=bound,
        dtype=jnp.float32,
    )

    # --- 1) small batch, f32 compute path (tight check) ---
    x = jax.random.normal(keys[15], (batch, d_in), dtype=jnp.float32)
    out = jax.block_until_ready(
        pinn_forward(x, b_stack, hidden_params, dense_w, dense_b,
                     compute_dtype=jnp.float32))
    ref = pinn_forward_ref(x, b_stack, hidden_params, dense_w, dense_b)
    assert out.shape == (batch, layer_sizes[-1])
    assert jnp.allclose(out, ref, atol=1e-4, rtol=1e-4), "mismatch vs reference"

    # --- 2) batch not divisible by the tile, small tile -> multi-step grid ---
    x2 = jax.random.normal(keys[14], (300, d_in), dtype=jnp.float32)
    out2 = jax.block_until_ready(
        pinn_forward(x2, b_stack, hidden_params, dense_w, dense_b,
                     tile_n=128, compute_dtype=jnp.float32))
    ref2 = pinn_forward_ref(x2, b_stack, hidden_params, dense_w, dense_b)
    assert out2.shape == (300, layer_sizes[-1])
    assert jnp.allclose(out2, ref2, atol=1e-4, rtol=1e-4), "mismatch (padded grid)"

    # --- 3) auto compute dtype (bf16 on v6e/v7x, f32 otherwise) ---
    auto_dt = _default_compute_dtype()
    out3 = jax.block_until_ready(
        pinn_forward(x2, b_stack, hidden_params, dense_w, dense_b))
    if auto_dt is jnp.float32:
        atol = rtol = 1e-4
    else:
        # bf16 activations vs f32 reference: loose tolerance; the f32 runs
        # above already provide the tight structural check.
        atol = rtol = 1e-1
    assert out3.shape == (300, layer_sizes[-1])
    assert jnp.allclose(out3, ref2, atol=atol, rtol=rtol), "mismatch (auto dtype)"

    print("KERNEL_OK")
</pallas_src>

<mosaic_0001>
module attributes {stable_mosaic.version = 11 : i64} {
  func.func @kernel(%arg0: i32, %arg1: memref<2x128xf32, #tpu.memory_space<vmem>>, %arg2: memref<32x2xf32, #tpu.memory_space<vmem>>, %arg3: memref<32x2xf32, #tpu.memory_space<vmem>>, %arg4: memref<32x32xf32, #tpu.memory_space<vmem>>, %arg5: memref<32x32xf32, #tpu.memory_space<vmem>>, %arg6: memref<32x1xf32, #tpu.memory_space<vmem>>, %arg7: memref<32x32xf32, #tpu.memory_space<vmem>>, %arg8: memref<32x1xf32, #tpu.memory_space<vmem>>, %arg9: memref<8x32xf32, #tpu.memory_space<vmem>>, %arg10: memref<8x32xf32, #tpu.memory_space<vmem>>, %arg11: memref<8x1xf32, #tpu.memory_space<vmem>>, %arg12: memref<8x128xf32, #tpu.memory_space<vmem>>) attributes {dimension_semantics = [#tpu.dimension_semantics<parallel>], iteration_bounds = array<i64: 1>, scalar_prefetch = 0 : i64, scratch_operands = 0 : i64, tpu.core_type = #tpu.core_type<tc>, window_params = [{transform_indices = @transform_0, window_bounds = array<i64: 2, 128>}, {pipeline_mode = #tpu.pipeline_mode<synchronous>, transform_indices = @transform_1, window_bounds = array<i64: 32, 2>}, {pipeline_mode = #tpu.pipeline_mode<synchronous>, transform_indices = @transform_2, window_bounds = array<i64: 32, 2>}, {pipeline_mode = #tpu.pipeline_mode<synchronous>, transform_indices = @transform_3, window_bounds = array<i64: 32, 32>}, {pipeline_mode = #tpu.pipeline_mode<synchronous>, transform_indices = @transform_4, window_bounds = array<i64: 32, 32>}, {pipeline_mode = #tpu.pipeline_mode<synchronous>, transform_indices = @transform_5, window_bounds = array<i64: 32, 1>}, {pipeline_mode = #tpu.pipeline_mode<synchronous>, transform_indices = @transform_6, window_bounds = array<i64: 32, 32>}, {pipeline_mode = #tpu.pipeline_mode<synchronous>, transform_indices = @transform_7, window_bounds = array<i64: 32, 1>}, {pipeline_mode = #tpu.pipeline_mode<synchronous>, transform_indices = @transform_8, window_bounds = array<i64: 8, 32>}, {pipeline_mode = #tpu.pipeline_mode<synchronous>, transform_indices = @transform_9, window_bounds = array<i64: 8, 32>}, {pipeline_mode = #tpu.pipeline_mode<synchronous>, transform_indices = @transform_10, window_bounds = array<i64: 8, 1>}, {transform_indices = @transform_11, window_bounds = array<i64: 8, 128>}]} {
    %c0 = arith.constant 0 : index
    %c0_0 = arith.constant 0 : index
    %0 = vector.load %arg1[%c0, %c0_0] : memref<2x128xf32, #tpu.memory_space<vmem>>, vector<2x128xf32>
    %c0_1 = arith.constant 0 : index
    %c0_2 = arith.constant 0 : index
    %1 = vector.load %arg4[%c0_1, %c0_2] : memref<32x32xf32, #tpu.memory_space<vmem>>, vector<32x32xf32>
    %c0_3 = arith.constant 0 : index
    %c0_4 = arith.constant 0 : index
    %2 = vector.load %arg5[%c0_3, %c0_4] : memref<32x32xf32, #tpu.memory_space<vmem>>, vector<32x32xf32>
    %c0_5 = arith.constant 0 : index
    %c0_6 = arith.constant 0 : index
    %3 = vector.load %arg6[%c0_5, %c0_6] : memref<32x1xf32, #tpu.memory_space<vmem>>, vector<32x1xf32>
    %c0_7 = arith.constant 0 : index
    %c0_8 = arith.constant 0 : index
    %4 = vector.load %arg7[%c0_7, %c0_8] : memref<32x32xf32, #tpu.memory_space<vmem>>, vector<32x32xf32>
    %c0_9 = arith.constant 0 : index
    %c0_10 = arith.constant 0 : index
    %5 = vector.load %arg8[%c0_9, %c0_10] : memref<32x1xf32, #tpu.memory_space<vmem>>, vector<32x1xf32>
    %c0_11 = arith.constant 0 : index
    %c0_12 = arith.constant 0 : index
    %6 = vector.load %arg11[%c0_11, %c0_12] : memref<8x1xf32, #tpu.memory_space<vmem>>, vector<8x1xf32>
    %c0_13 = arith.constant 0 : index
    %c0_14 = arith.constant 0 : index
    %7 = vector.load %arg2[%c0_13, %c0_14] : memref<32x2xf32, #tpu.memory_space<vmem>>, vector<32x2xf32>
    %8 = vector.extract_strided_slice %7 {offsets = [0, 0], sizes = [32, 1], strides = [1, 1]} : vector<32x2xf32> to vector<32x1xf32>
    %9 = vector.extract_strided_slice %0 {offsets = [0, 0], sizes = [1, 128], strides = [1, 1]} : vector<2x128xf32> to vector<1x128xf32>
    %10 = vector.broadcast %8 : vector<32x1xf32> to vector<32x128xf32>
    %11 = vector.broadcast %9 : vector<1x128xf32> to vector<32x128xf32>
    %12 = arith.mulf %10, %11 : vector<32x128xf32>
    %13 = vector.extract_strided_slice %7 {offsets = [0, 1], sizes = [32, 1], strides = [1, 1]} : vector<32x2xf32> to vector<32x1xf32>
    %14 = vector.extract_strided_slice %0 {offsets = [1, 0], sizes = [1, 128], strides = [1, 1]} : vector<2x128xf32> to vector<1x128xf32>
    %15 = vector.broadcast %13 : vector<32x1xf32> to vector<32x128xf32>
    %16 = vector.broadcast %14 : vector<1x128xf32> to vector<32x128xf32>
    %17 = arith.mulf %15, %16 : vector<32x128xf32>
    %18 = arith.addf %12, %17 : vector<32x128xf32>
    %19 = math.cos %18 : vector<32x128xf32>
    %20 = math.sin %18 : vector<32x128xf32>
    %cst = arith.constant dense<0.000000e+00> : vector<32x128xf32>
    %21 = tpu.matmul %1, %19, %cst {dimension_numbers = #tpu.dot_dimension_numbers<[1], [0], [0], [1], [0, 0, 1, 1], [], []>} : vector<32x32xf32>, vector<32x128xf32>, vector<32x128xf32> -> vector<32x128xf32>
    %cst_15 = arith.constant dense<0.000000e+00> : vector<32x128xf32>
    %22 = tpu.matmul %2, %20, %cst_15 {dimension_numbers = #tpu.dot_dimension_numbers<[1], [0], [0], [1], [0, 0, 1, 1], [], []>} : vector<32x32xf32>, vector<32x128xf32>, vector<32x128xf32> -> vector<32x128xf32>
    %23 = arith.addf %21, %22 : vector<32x128xf32>
    %24 = vector.broadcast %3 : vector<32x1xf32> to vector<32x128xf32>
    %25 = arith.addf %23, %24 : vector<32x128xf32>
    %26 = math.tanh %25 : vector<32x128xf32>
    %cst_16 = arith.constant dense<0.000000e+00> : vector<32x128xf32>
    %27 = tpu.matmul %4, %26, %cst_16 {dimension_numbers = #tpu.dot_dimension_numbers<[1], [0], [0], [1], [0, 0, 1, 1], [], []>} : vector<32x32xf32>, vector<32x128xf32>, vector<32x128xf32> -> vector<32x128xf32>
    %28 = vector.broadcast %5 : vector<32x1xf32> to vector<32x128xf32>
    %29 = arith.addf %27, %28 : vector<32x128xf32>
    %30 = math.tanh %29 : vector<32x128xf32>
    %c0_17 = arith.constant 0 : index
    %c0_18 = arith.constant 0 : index
    %31 = vector.load %arg9[%c0_17, %c0_18] : memref<8x32xf32, #tpu.memory_space<vmem>>, vector<8x32xf32>
    %cst_19 = arith.constant dense<0.000000e+00> : vector<8x128xf32>
    %32 = tpu.matmul %31, %30, %cst_19 {dimension_numbers = #tpu.dot_dimension_numbers<[1], [0], [0], [1], [0, 0, 1, 1], [], []>} : vector<8x32xf32>, vector<32x128xf32>, vector<8x128xf32> -> vector<8x128xf32>
    %c0_20 = arith.constant 0 : index
    %c0_21 = arith.constant 0 : index
    %33 = vector.load %arg3[%c0_20, %c0_21] : memref<32x2xf32, #tpu.memory_space<vmem>>, vector<32x2xf32>
    %34 = vector.extract_strided_slice %33 {offsets = [0, 0], sizes = [32, 1], strides = [1, 1]} : vector<32x2xf32> to vector<32x1xf32>
    %35 = vector.extract_strided_slice %0 {offsets = [0, 0], sizes = [1, 128], strides = [1, 1]} : vector<2x128xf32> to vector<1x128xf32>
    %36 = vector.broadcast %34 : vector<32x1xf32> to vector<32x128xf32>
    %37 = vector.broadcast %35 : vector<1x128xf32> to vector<32x128xf32>
    %38 = arith.mulf %36, %37 : vector<32x128xf32>
    %39 = vector.extract_strided_slice %33 {offsets = [0, 1], sizes = [32, 1], strides = [1, 1]} : vector<32x2xf32> to vector<32x1xf32>
    %40 = vector.extract_strided_slice %0 {offsets = [1, 0], sizes = [1, 128], strides = [1, 1]} : vector<2x128xf32> to vector<1x128xf32>
    %41 = vector.broadcast %39 : vector<32x1xf32> to vector<32x128xf32>
    %42 = vector.broadcast %40 : vector<1x128xf32> to vector<32x128xf32>
    %43 = arith.mulf %41, %42 : vector<32x128xf32>
    %44 = arith.addf %38, %43 : vector<32x128xf32>
    %45 = math.cos %44 : vector<32x128xf32>
    %46 = math.sin %44 : vector<32x128xf32>
    %cst_22 = arith.constant dense<0.000000e+00> : vector<32x128xf32>
    %47 = tpu.matmul %1, %45, %cst_22 {dimension_numbers = #tpu.dot_dimension_numbers<[1], [0], [0], [1], [0, 0, 1, 1], [], []>} : vector<32x32xf32>, vector<32x128xf32>, vector<32x128xf32> -> vector<32x128xf32>
    %cst_23 = arith.constant dense<0.000000e+00> : vector<32x128xf32>
    %48 = tpu.matmul %2, %46, %cst_23 {dimension_numbers = #tpu.dot_dimension_numbers<[1], [0], [0], [1], [0, 0, 1, 1], [], []>} : vector<32x32xf32>, vector<32x128xf32>, vector<32x128xf32> -> vector<32x128xf32>
    %49 = arith.addf %47, %48 : vector<32x128xf32>
    %50 = vector.broadcast %3 : vector<32x1xf32> to vector<32x128xf32>
    %51 = arith.addf %49, %50 : vector<32x128xf32>
    %52 = math.tanh %51 : vector<32x128xf32>
    %cst_24 = arith.constant dense<0.000000e+00> : vector<32x128xf32>
    %53 = tpu.matmul %4, %52, %cst_24 {dimension_numbers = #tpu.dot_dimension_numbers<[1], [0], [0], [1], [0, 0, 1, 1], [], []>} : vector<32x32xf32>, vector<32x128xf32>, vector<32x128xf32> -> vector<32x128xf32>
    %54 = vector.broadcast %5 : vector<32x1xf32> to vector<32x128xf32>
    %55 = arith.addf %53, %54 : vector<32x128xf32>
    %56 = math.tanh %55 : vector<32x128xf32>
    %c0_25 = arith.constant 0 : index
    %c0_26 = arith.constant 0 : index
    %57 = vector.load %arg10[%c0_25, %c0_26] : memref<8x32xf32, #tpu.memory_space<vmem>>, vector<8x32xf32>
    %cst_27 = arith.constant dense<0.000000e+00> : vector<8x128xf32>
    %58 = tpu.matmul %57, %56, %cst_27 {dimension_numbers = #tpu.dot_dimension_numbers<[1], [0], [0], [1], [0, 0, 1, 1], [], []>} : vector<8x32xf32>, vector<32x128xf32>, vector<8x128xf32> -> vector<8x128xf32>
    %59 = arith.addf %32, %58 : vector<8x128xf32>
    %60 = vector.broadcast %6 : vector<8x1xf32> to vector<8x128xf32>
    %61 = arith.addf %59, %60 : vector<8x128xf32>
    %c0_28 = arith.constant 0 : index
    %c0_29 = arith.constant 0 : index
    %62 = vector.load %arg12[%c0_28, %c0_29] : memref<8x128xf32, #tpu.memory_space<vmem>>, vector<8x128xf32>
    tpu.vector_store %arg12[%c0_28, %c0_29], %61 {strides = array<i32>} : memref<8x128xf32, #tpu.memory_space<vmem>>, vector<8x128xf32>,
    return
  }
  func.func @transform_0(%arg0: i32) -> (i32, i32) {
    %c0_i32 = arith.constant 0 : i32
    %c0_i32_0 = arith.constant 0 : i32
    return %c0_i32, %arg0 : i32, i32
  }
  func.func @transform_1(%arg0: i32) -> (i32, i32) {
    %c0_i32 = arith.constant 0 : i32
    %c0_i32_0 = arith.constant 0 : i32
    %c0_i32_1 = arith.constant 0 : i32
    return %c0_i32, %c0_i32_0 : i32, i32
  }
  func.func @transform_2(%arg0: i32) -> (i32, i32) {
    %c0_i32 = arith.constant 0 : i32
    %c0_i32_0 = arith.constant 0 : i32
    %c0_i32_1 = arith.constant 0 : i32
    return %c0_i32, %c0_i32_0 : i32, i32
  }
  func.func @transform_3(%arg0: i32) -> (i32, i32) {
    %c0_i32 = arith.constant 0 : i32
    %c0_i32_0 = arith.constant 0 : i32
    %c0_i32_1 = arith.constant 0 : i32
    return %c0_i32, %c0_i32_0 : i32, i32
  }
  func.func @transform_4(%arg0: i32) -> (i32, i32) {
    %c0_i32 = arith.constant 0 : i32
    %c0_i32_0 = arith.constant 0 : i32
    %c0_i32_1 = arith.constant 0 : i32
    return %c0_i32, %c0_i32_0 : i32, i32
  }
  func.func @transform_5(%arg0: i32) -> (i32, i32) {
    %c0_i32 = arith.constant 0 : i32
    %c0_i32_0 = arith.constant 0 : i32
    %c0_i32_1 = arith.constant 0 : i32
    return %c0_i32, %c0_i32_0 : i32, i32
  }
  func.func @transform_6(%arg0: i32) -> (i32, i32) {
    %c0_i32 = arith.constant 0 : i32
    %c0_i32_0 = arith.constant 0 : i32
    %c0_i32_1 = arith.constant 0 : i32
    return %c0_i32, %c0_i32_0 : i32, i32
  }
  func.func @transform_7(%arg0: i32) -> (i32, i32) {
    %c0_i32 = arith.constant 0 : i32
    %c0_i32_0 = arith.constant 0 : i32
    %c0_i32_1 = arith.constant 0 : i32
    return %c0_i32, %c0_i32_0 : i32, i32
  }
  func.func @transform_8(%arg0: i32) -> (i32, i32) {
    %c0_i32 = arith.constant 0 : i32
    %c0_i32_0 = arith.constant 0 : i32
    %c0_i32_1 = arith.constant 0 : i32
    return %c0_i32, %c0_i32_0 : i32, i32
  }
  func.func @transform_9(%arg0: i32) -> (i32, i32) {
    %c0_i32 = arith.constant 0 : i32
    %c0_i32_0 = arith.constant 0 : i32
    %c0_i32_1 = arith.constant 0 : i32
    return %c0_i32, %c0_i32_0 : i32, i32
  }
  func.func @transform_10(%arg0: i32) -> (i32, i32) {
    %c0_i32 = arith.constant 0 : i32
    %c0_i32_0 = arith.constant 0 : i32
    %c0_i32_1 = arith.constant 0 : i32
    return %c0_i32, %c0_i32_0 : i32, i32
  }
  func.func @transform_11(%arg0: i32) -> (i32, i32) {
    %c0_i32 = arith.constant 0 : i32
    %c0_i32_0 = arith.constant 0 : i32
    return %c0_i32, %arg0 : i32, i32
  }
}

</mosaic_0001>

<bundles_post_ra>
// kernel: tpu_custom_call.1
= control target key start
LH: loop header
LB: loop body
LE: loop exit
PB: predicated region body
PF: predicated region fallthrough
CT: control target
= control target key end

     0   :  { %v3148_v3 = vmov 1   ;;  %v3149_v4 = vmov 0   ;;  %s4528_s0 = inlined_call_operand.vmem [shape: f32[2,128], index: 0, kind: input, shape index: {}]   ;;  %s4529_s1 = inlined_call_operand.vmem [shape: f32[32,2], index: 1, kind: input, shape index: {}]   ;;  %s4530_s2 = inlined_call_operand.vmem [shape: f32[32,2], index: 2, kind: input, shape index: {}]   ;;  %s4531_s3 = inlined_call_operand.vmem [shape: f32[32,32], index: 3, kind: input, shape index: {}]   ;;  %s4532_s4 = inlined_call_operand.vmem [shape: f32[32,32], index: 4, kind: input, shape index: {}]   ;;  %s4533_s5 = inlined_call_operand.vmem [shape: f32[32,1], index: 5, kind: input, shape index: {}]   ;;  %s4534_s6 = inlined_call_operand.vmem [shape: f32[32,32], index: 6, kind: input, shape index: {}]   ;;  %s4535_s7 = inlined_call_operand.vmem [shape: f32[32,1], index: 7, kind: input, shape index: {}]   ;;  %s4536_s8 = inlined_call_operand.vmem [shape: f32[8,32], index: 8, kind: input, shape index: {}]   ;;  %s4537_s9 = inlined_call_operand.vmem [shape: f32[8,32], index: 9, kind: input, shape index: {}]   ;;  %s4538_s10 = inlined_call_operand.vmem [shape: f32[8,1], index: 10, kind: input, shape index: {}]   ;;  %s4539_s11 = inlined_call_operand.hbm [shape: f32[8,128], index: 11, kind: output, shape index: {}]  }
   0x1   :  { %v64_v0 = vld [vmem:[%s4529_s1 + $0x18] sm:$0xff]  ;;  %v63_v1 = vld [vmem:[%s4529_s1 + $0x10] sm:$0xff]  ;;  %v62_v2 = vld [vmem:[%s4529_s1 + $0x8] sm:$0xff]  ;;  %3076 = vset.pattern.permute.xlu0 %v3148_v3  ;;  %3080 = vset.pattern.permute.xlu2 %v3149_v4 }
   0x2   :  { %3078 = vset.pattern.permute.xlu1 %v3149_v4  ;;  %103 = vperm.xlu0 %3076, %v64_v0  }
   0x3   :  { %16 = vsyncpa [#allocation3], 0  ;;  %77 = vperm.xlu1 %3078, %v63_v1   ;;  %72 = vperm.xlu2 %3080, %v62_v2   ;;  %v1531_v5 = vld [vmem:[%s4530_s2 + $0x18] sm:$0xff]  ;;  %v61_v6 = vld [vmem:[%s4529_s1] sm:$0xff]  ;;  %v3150_v58 = vmov 2475754826  }
   0x4   :  { %v1529_v7 = vld [vmem:[%s4530_s2 + $0x8] sm:$0xff]  ;;  %v1530_v8 = vld [vmem:[%s4530_s2 + $0x10] sm:$0xff]  ;;  %v1528_v9 = vld [vmem:[%s4530_s2] sm:$0xff]  ;;  %v3151_v60 = vmov 2131351028   ;;  %s3156_s29 = smov [#allocation2]  }
   0x5   :  { %v51_v10 = vld [vmem:[%s4533_s5 + $0x18] sm:$0xff]  ;;  %v48_v11 = vld [vmem:[%s4533_s5] sm:$0xff]  ;;  %v58_v12 = vld [vmem:[%s4535_s7 + $0x10] sm:$0xff]  ;;  %v3152_v63 = vmov 2102212464   ;;  %s2974_s30 = sshll.u32 %s3156_s29, 4  ;;  %s2975_s30 = int_to_ptr.vmem [resolvable:$true] %s2974_s30 }
   0x6   :  { %v60_v13 = vld [vmem:[%s4538_s10] sm:$0xff]  ;;  %s2976_s13 = sshll.u32 %s4539_s11, 4  ;;  %s2977_s13 = int_to_ptr.hbm [resolvable:$true] %s2976_s13 }
   0x7   :  { %v39_v15 = vld [vmem:[%s4528_s0] sm:$0x3] }
   0x8   :  { %v3264_v16 = vperm.slane %v39_v15, 0  ;;  %v3266_v18 = vperm.slane %v39_v15, 1 }
   0xa   :  { %3077 = vset.pattern.permute.xlu0 %v3149_v4 }
   0xb   :  { %3079 = vset.pattern.permute.xlu1 %v3148_v3  ;;  %3081 = vset.pattern.permute.xlu2 %v3148_v3 }
   0xc   :  { %82 = vperm.xlu0 %3077, %v64_v0   ;;  %99 = vperm.xlu1 %3079, %v63_v1  }
   0xd   :  { %95 = vperm.xlu2 %3081, %v62_v2   ;;  %v3153_v2 = vmov 920167782  }
  0x14   :  { %1549 = vperm.xlu0 %3077, %v1531_v5   ;;  %3082 = vset.pattern.permute.xlu1 %v3149_v4 }
  0x15   :  { %67 = vperm.xlu1 %3082, %v61_v6   ;;  %91 = vperm.xlu2 %3081, %v61_v6  }
  0x1c   :  { %3085 = vset.pattern.permute.xlu0 %v3148_v3 }
  0x1d   :  { %1561 = vperm.xlu0 %3085, %v1529_v7   ;;  %3083 = vset.pattern.permute.xlu1 %v3148_v3 }
  0x1e   :  { %1569 = vperm.xlu1 %3083, %v1531_v5   ;;  %3084 = vset.pattern.permute.xlu2 %v3149_v4 }
  0x1f   :  { %1544 = vperm.xlu2 %3084, %v1530_v8  }
  0x25   :  { %3089 = vset.pattern.permute.xlu0 %v3149_v4 }
  0x26   :  { %1565 = vperm.xlu1 %3083, %v1530_v8  }
  0x27   :  { %1539 = vperm.xlu2 %3084, %v1529_v7  }
  0x2e   :  { %3086 = vset.pattern.permute.xlu1 %v3149_v4 }
  0x2f   :  { %1534 = vperm.xlu1 %3086, %v1528_v9   ;;  %3087 = vset.pattern.permute.xlu2 %v3148_v3 }
  0x30   :  { %1557 = vperm.xlu2 %3087, %v1528_v9  }
  0x37   :  { %1451 = vperm.xlu1 %3086, %v51_v10  }
  0x38   :  { %3088 = vset.pattern.permute.xlu2 %v3149_v4 }
  0x3f   :  { %1436 = vperm.xlu1 %3086, %v48_v11   ;;  %v3154_v11 = vmov 683565275  }
  0x47   :  { %1474 = vperm.xlu1 %3086, %v58_v12  }
  0x4f   :  { %2964 = vperm.xlu1 %3086, %v60_v13  }
  0x5d   :  { %v73_v14 = vpop.permute.xlu2 %72 }
  0x5e   :  { %v87_v21 = vmul.f32 %v3264_v16, %v73_v14 }
  0x67   :  { %v96_v17 = vpop.permute.xlu2 %95 }
  0x68   :  { %v108_v22 = vmul.f32 %v3266_v18, %v96_v17 }
  0x6a   :  { %v3270_v23 = vadd.f32 %v108_v22, %v87_v21 }
  0x6c   :  { %v272_v29 = vand.u32 2139095040, %v3270_v23 }
  0x6e   :  { %v273_v34 = vshrl.u32 %v272_v29, 23 }
  0x6f   :  { %v92_v24 = vpop.permute.xlu2 %91 }
  0x70   :  { %v2988_v40 = vadd.s32 4294967169, %v273_v34  ;;  %v107_v42 = vmul.f32 %v3266_v18, %v92_v24 }
  0x72   :  { %v279_v47 = vadd.s32 1, %v2988_v40 }
  0x74   :  { %v104_v19 = vpop.permute.xlu0 %103  ;;  %vm280_vm1 = vcmp.gt.s32.totalorder %v279_v47, 0 }
  0x75   :  { %v78_v20 = vpop.permute.xlu1 %77  ;;  %v110_v25 = vmul.f32 %v3266_v18, %v104_v19  ;;  %v281_v5 = vsel %vm280_vm1, %v279_v47, 0 }
  0x76   :  { %v88_v32 = vmul.f32 %v3264_v16, %v78_v20  ;;  %v3155_v20 = vmov 1326507024   ;;  %v3318_v29 = vand.u32 31, %v281_v5 }
  0x79   :  { %v3282_v37 = vpop.permute.xlu2 %1544 }
  0x7e   :  { %v83_v26 = vpop.permute.xlu0 %82  ;;  %v100_v27 = vpop.permute.xlu1 %99 }
  0x7f   :  { %v89_v28 = vmul.f32 %v3264_v16, %v83_v26  ;;  %v109_v30 = vmul.f32 %v3266_v18, %v100_v27 }
  0x81   :  { %v3276_v31 = vadd.f32 %v110_v25, %v89_v28  ;;  %v3280_v35 = vadd.f32 %v109_v30, %v88_v32  ;;  %v1540_v55 = vpop.permute.xlu2 %1539 }
  0x82   :  { %v1553_v7 = vmul.f32 %v1540_v55, %v3264_v16 }
  0x83   :  { %v580_v33 = vand.u32 2139095040, %v3276_v31  ;;  %v426_v41 = vand.u32 2139095040, %v3280_v35  ;;  %v577_v52 = vand.u32 2147483647, %v3276_v31  ;;  %v423_v14 = vand.u32 2147483647, %v3280_v35 }
  0x85   :  { %v581_v36 = vshrl.u32 %v580_v33, 23  ;;  %v427_v49 = vshrl.u32 %v426_v41, 23  ;;  %v584_v57 = vand.u32 8388607, %v577_v52  ;;  %v430_v32 = vand.u32 8388607, %v423_v14 }
  0x86   :  { %v1550_v45 = vpop.permute.xlu0 %1549 }
  0x87   :  { %v2994_v38 = vadd.s32 4294967169, %v581_v36  ;;  %v68_v39 = vpop.permute.xlu1 %67  ;;  %v2991_v54 = vadd.s32 4294967169, %v427_v49  ;;  %v585_v19 = vor.u32 8388608, %v584_v57  ;;  %v1555_v33 = vmul.f32 %v1550_v45, %v3264_v16 }
  0x88   :  { %v86_v43 = vmul.f32 %v3264_v16, %v68_v39 }
  0x89   :  { %v587_v44 = vadd.s32 1, %v2994_v38  ;;  %v433_v9 = vadd.s32 1, %v2991_v54  ;;  %v3327_v34 = vshll.u32 %v585_v19, 8 }
  0x8a   :  { %v3287_v46 = vadd.f32 %v107_v42, %v86_v43 }
  0x8b   :  { %vm588_vm0 = vcmp.gt.s32.totalorder %v587_v44, 0  ;;  %vm434_vm2 = vcmp.gt.s32.totalorder %v433_v9, 0  ;;  %v627_v55 = vshrl.u32 %v3327_v34, 16 }
  0x8c   :  { %v589_v48 = vsel %vm588_vm0, %v587_v44, 0  ;;  %v118_v51 = vand.u32 2139095040, %v3287_v46  ;;  %v435_v41 = vsel %vm434_vm2, %v433_v9, 0 }
  0x8d   :  { %v591_v50 = vand.u32 31, %v589_v48  ;;  %v3310_v15 = vshrl.u32 %v589_v48, 5  ;;  %v1558_v48 = vpop.permute.xlu2 %1557  ;;  %v3355_v57 = vand.u32 31, %v435_v41 }
  0x8e   :  { %v119_v56 = vshrl.u32 %v118_v51, 23  ;;  %v431_v51 = vor.u32 8388608, %v430_v32 }
  0x8f   :  { %v3291_v53 = vsub.s32 32, %v591_v50  ;;  %v597_v59 = vshll.u32 %v3150_v58, %v591_v50  ;;  %v600_v61 = vshll.u32 %v3151_v60, %v591_v50  ;;  %v603_v1 = vshll.u32 %v3152_v63, %v591_v50  ;;  %v1562_v6 = vpop.permute.xlu0 %1561 }
  0x90   :  { %v606_v8 = vshll.u32 %v3153_v2, %v591_v50  ;;  %v1570_v10 = vpop.permute.xlu1 %1569  ;;  %v594_v12 = vshll.u32 %v3154_v11, %v591_v50  ;;  %v2985_v17 = vadd.s32 4294967169, %v119_v56  ;;  %v1573_v22 = vmul.f32 %v1562_v6, %v3266_v18 }
  0x91   :  { %v598_v62 = vshrl.u32 %v3151_v60, %v3291_v53  ;;  %v601_v0 = vshrl.u32 %v3152_v63, %v3291_v53  ;;  %v604_v3 = vshrl.u32 %v3153_v2, %v3291_v53  ;;  %v595_v13 = vshrl.u32 %v3150_v58, %v3291_v53 }
  0x92   :  { %v607_v21 = vshrl.u32 %v3155_v20, %v3291_v53  ;;  %v1575_v27 = vmul.f32 %v1570_v10, %v3266_v18  ;;  %vm609_vm3 = vcmp.lt.s32.totalorder %v3310_v15, 1  ;;  %vm612_vm4 = vcmp.lt.s32.totalorder %v3310_v15, 4 }
  0x93   :  { %v3315_v24 = vor.u32 %v598_v62, %v597_v59  ;;  %v602_v25 = vor.u32 %v601_v0, %v600_v61  ;;  %v605_v26 = vor.u32 %v604_v3, %v603_v1  ;;  %v3320_v30 = vor.u32 %v595_v13, %v594_v12 }
  0x94   :  { %v608_v28 = vor.u32 %v607_v21, %v606_v8  ;;  %v125_v36 = vadd.s32 1, %v2985_v17  ;;  %v3329_v38 = vadd.f32 %v1573_v22, %v1553_v7  ;;  %v3336_v42 = vadd.f32 %v1575_v27, %v1555_v33 }
  0x95   :  { %v618_v39 = vsel %vm612_vm4, %v605_v26, 920167782  ;;  %v621_v40 = vsel %vm609_vm3, %v3315_v24, %v602_v25  ;;  %vm611_vm5 = vcmp.lt.s32.totalorder %v3310_v15, 3  ;;  %vm610_vm6 = vcmp.lt.s32.totalorder %v3310_v15, 2 }
  0x96   :  { %v622_v43 = vsel %vm612_vm4, %v608_v28, 1326507024  ;;  %v617_v44 = vsel %vm609_vm3, %v3320_v30, %v3315_v24  ;;  %v619_v45 = vsel %vm611_vm5, %v602_v25, %v618_v39  ;;  %v626_v50 = vand.u32 65535, %v3327_v34 }
  0x97   :  { %v623_v47 = vsel %vm611_vm5, %v605_v26, %v622_v43  ;;  %vm126_vm7 = vcmp.gt.s32.totalorder %v125_v36, 0  ;;  %v1737_v54 = vand.u32 2139095040, %v3329_v38  ;;  %v2045_v59 = vand.u32 2139095040, %v3336_v42 }
  0x98   :  { %v624_v49 = vsel %vm610_vm6, %v621_v40, %v623_v47  ;;  %v620_v61 = vsel %vm610_vm6, %v617_v44, %v619_v45  ;;  %v3360_v0 = vshrl.u32 %v281_v5, 5  ;;  %v3363_v1 = vsub.s32 32, %v3318_v29  ;;  %v1566_v33 = vpop.permute.xlu1 %1565 }
  0x99   :  { %v628_v56 = vand.u32 65535, %v624_v49  ;;  %v629_v62 = vshrl.u32 %v624_v49, 16  ;;  %v1554_v3 = vmul.f32 %v3282_v37, %v3264_v16  ;;  %v3368_v6 = vmul.f32 %v1558_v48, %v3266_v18 }
  0x9a   :  { %v3370_v7 = vshrl.u32 %v435_v41, 5  ;;  %v3372_v8 = vsel %vm126_vm7, %v125_v36, 0  ;;  %v1738_v12 = vshrl.u32 %v1737_v54, 23  ;;  %v650_v13 = vand.u32 65535, %v620_v61 }
  0x9b   :  { %v631_v9 = vmul.u32 %v629_v62, %v626_v50  ;;  %v632_v10 = vmul.u32 %v628_v56, %v627_v55  ;;  %v651_v17 = vshrl.u32 %v620_v61, 16  ;;  %v3374_v5 = vshll.u32 %v431_v51, 8 }
  0x9c   :  { %v3377_v19 = vsub.s32 32, %v3355_v57  ;;  %v2046_v21 = vshrl.u32 %v2045_v59, 23  ;;  %v630_v22 = vmul.u32 %v628_v56, %v626_v50  ;;  %v3380_v26 = vand.u32 31, %v3372_v8 }
  0x9d   :  { %v634_v37 = vshll.u32 %v631_v9, 16  ;;  %v593_v27 = vshrl.u32 %v3154_v11, %v3291_v53  ;;  %v614_v28 = vsel %vm612_vm4, %v602_v25, 2102212464  ;;  %v653_v32 = vmul.u32 %v651_v17, %v626_v50 }
  0x9e   :  { %v633_v36 = vmul.u32 %v629_v62, %v627_v55  ;;  %v636_v39 = vshll.u32 %v632_v10, 16  ;;  %v3024_v41 = vadd.s32 4294967169, %v1738_v12  ;;  %v654_v44 = vmul.u32 %v650_v13, %v627_v55 }
  0x9f   :  { %vm638_vm8 = vc.u32 %v630_v22, %v634_v37  ;;  %v640_v40 = vadd.s32 %v634_v37, %v630_v22  ;;  %v656_v45 = vshll.u32 %v653_v32, 16  ;;  %v3030_v47 = vadd.s32 4294967169, %v2046_v21 }
  0xa0   :  { %v639_v43 = vsel %vm638_vm8, 1, %v3149_v4  ;;  %v652_v49 = vmul.u32 %v650_v13, %v626_v50  ;;  %v1574_v53 = vmul.f32 %v1566_v33, %v3266_v18  ;;  %v613_v25 = vsel %vm609_vm3, %v593_v27, %v3320_v30 }
  0xa1   :  { %v641_v48 = vadd.s32 %v639_v43, %v633_v36  ;;  %vm642_vm9 = vc.u32 %v640_v40, %v636_v39  ;;  %v615_v51 = vsel %vm611_vm5, %v3315_v24, %v614_v28  ;;  %v635_v56 = vshrl.u32 %v631_v9, 16 }
  0xa2   :  { %v643_v54 = vsel %vm642_vm9, 1, %v3149_v4  ;;  %v655_v61 = vmul.u32 %v651_v17, %v627_v55  ;;  %vm660_vm10 = vc.u32 %v652_v49, %v656_v45  ;;  %v1744_v62 = vadd.s32 1, %v3024_v41 }
  0xa3   :  { %v645_v59 = vadd.s32 %v643_v54, %v641_v48  ;;  %v658_v12 = vshll.u32 %v654_v44, 16  ;;  %v661_v50 = vsel %vm660_vm10, 1, %v3149_v4  ;;  %v662_v13 = vadd.s32 %v656_v45, %v652_v49 }
  0xa4   :  { %v3396_v18 = vadd.s32 1, %v3030_v47  ;;  %v616_v30 = vsel %vm610_vm6, %v613_v25, %v615_v51  ;;  %v663_v22 = vadd.s32 %v661_v50, %v655_v61  ;;  %v3400_v37 = vadd.f32 %v1574_v53, %v1554_v3 }
  0xa5   :  { %v646_v21 = vadd.s32 %v645_v59, %v635_v56  ;;  %vm664_vm11 = vc.u32 %v662_v13, %v658_v12  ;;  %v441_v24 = vshrl.u32 %v3150_v58, %v3377_v19  ;;  %v444_v55 = vshrl.u32 %v3151_v60, %v3377_v19 }
  0xa6   :  { %v637_v9 = vshrl.u32 %v632_v10, 16  ;;  %v657_v17 = vshrl.u32 %v653_v32, 16  ;;  %v665_v27 = vsel %vm664_vm11, 1, %v3149_v4  ;;  %v440_v28 = vshll.u32 %v3154_v11, %v3355_v57 }
  0xa7   :  { %v667_v15 = vadd.s32 %v665_v27, %v663_v22  ;;  %v443_v33 = vshll.u32 %v3150_v58, %v3355_v57  ;;  %v446_v3 = vshll.u32 %v3151_v60, %v3355_v57  ;;  %v447_v36 = vshrl.u32 %v3152_v63, %v3377_v19 }
  0xa8   :  { %vm1745_vm12 = vcmp.gt.s32.totalorder %v1744_v62, 0  ;;  %v3415_v39 = vadd.s32 %v646_v21, %v637_v9  ;;  %v659_v10 = vshrl.u32 %v654_v44, 16  ;;  %v3417_v32 = vadd.s32 %v662_v13, %v658_v12 }
  0xa9   :  { %v668_v40 = vadd.s32 %v667_v15, %v657_v17  ;;  %v442_v41 = vor.u32 %v441_v24, %v440_v28  ;;  %v3419_v43 = vor.u32 %v444_v55, %v443_v33  ;;  %v448_v45 = vor.u32 %v447_v36, %v446_v3 }
  0xaa   :  { %v449_v47 = vshll.u32 %v3152_v63, %v3355_v57  ;;  %v450_v48 = vshrl.u32 %v3153_v2, %v3377_v19  ;;  %v452_v49 = vshll.u32 %v3153_v2, %v3355_v57  ;;  %v453_v53 = vshrl.u32 %v3155_v20, %v3377_v19 }
  0xab   :  { %v1746_v44 = vsel %vm1745_vm12, %v1744_v62, 0  ;;  %vm2053_vm13 = vcmp.gt.s32.totalorder %v3396_v18, 0  ;;  %v669_v25 = vadd.s32 %v668_v40, %v659_v10  ;;  %v670_v51 = vmul.u32 %v3327_v34, %v616_v30 }
  0xac   :  { %vm672_vm14 = vc.u32 %v3415_v39, %v3417_v32  ;;  %v451_v54 = vor.u32 %v450_v48, %v449_v47  ;;  %v454_v56 = vor.u32 %v453_v53, %v452_v49  ;;  %vm455_vm15 = vcmp.lt.s32.totalorder %v3370_v7, 1 }
  0xad   :  { %v673_v59 = vadd.s32 1, %v669_v25  ;;  %vm458_vm0 = vcmp.lt.s32.totalorder %v3370_v7, 4  ;;  %v463_v57 = vsel %vm455_vm15, %v442_v41, %v3419_v43  ;;  %v467_v61 = vsel %vm455_vm15, %v3419_v43, %v448_v45 }
  0xae   :  { %v1891_v34 = vand.u32 2139095040, %v3400_v37  ;;  %vm457_vm1 = vcmp.lt.s32.totalorder %v3370_v7, 3  ;;  %v464_v62 = vsel %vm458_vm0, %v451_v54, 920167782  ;;  %v468_v12 = vsel %vm458_vm0, %v454_v56, 1326507024 }
  0xaf   :  { %v674_v50 = vsel %vm672_vm14, %v673_v59, %v669_v25  ;;  %vm456_vm2 = vcmp.lt.s32.totalorder %v3370_v7, 2  ;;  %v465_v13 = vsel %vm457_vm1, %v448_v45, %v464_v62  ;;  %v469_v30 = vsel %vm457_vm1, %v451_v54, %v468_v12 }
  0xb0   :  { %v675_v21 = vadd.s32 %v674_v50, %v670_v51  ;;  %v466_v22 = vsel %vm456_vm2, %v463_v57, %v465_v13  ;;  %v470_v24 = vsel %vm456_vm2, %v467_v61, %v469_v30  ;;  %v472_v55 = vand.u32 65535, %v3374_v5 }
  0xb1   :  { %v473_v9 = vshrl.u32 %v3374_v5, 16  ;;  %v474_v17 = vand.u32 65535, %v470_v24  ;;  %v475_v27 = vshrl.u32 %v470_v24, 16  ;;  %v497_v28 = vshrl.u32 %v466_v22, 16 }
  0xb2   :  { %v3459_v15 = vshrl.u32 %v3372_v8, 5  ;;  %v3462_v33 = vsub.s32 32, %v3380_v26  ;;  %v676_v3 = vadd.s32 536870912, %v675_v21  ;;  %v269_v36 = vand.u32 2147483647, %v3270_v23 }
  0xb3   :  { %v3465_v10 = vshrl.u32 %v1746_v44, 5  ;;  %v477_v40 = vmul.u32 %v475_v27, %v472_v55  ;;  %v478_v47 = vmul.u32 %v474_v17, %v473_v9  ;;  %v496_v48 = vand.u32 65535, %v466_v22 }
  0xb4   :  { %v3467_v49 = vand.u32 31, %v1746_v44  ;;  %v2054_v53 = vsel %vm2053_vm13, %v3396_v18, 0  ;;  %v677_v25 = vshrl.u32 %v676_v3, 30  ;;  %v499_v8 = vmul.u32 %v497_v28, %v472_v55 }
  0xb5   :  { %v1892_v51 = vshrl.u32 %v1891_v34, 23  ;;  %v439_v54 = vshrl.u32 %v3154_v11, %v3377_v19  ;;  %v476_v56 = vmul.u32 %v474_v17, %v472_v55  ;;  %v480_v59 = vshll.u32 %v477_v40, 16 }
  0xb6   :  { %v678_v57 = vshll.u32 %v677_v25, 30  ;;  %v460_v61 = vsel %vm458_vm0, %v448_v45, 2102212464  ;;  %v479_v62 = vmul.u32 %v475_v27, %v473_v9  ;;  %v502_v12 = vshll.u32 %v499_v8, 16 }
  0xb7   :  { %v482_v44 = vshll.u32 %v478_v47, 16  ;;  %vm484_vm3 = vc.u32 %v476_v56, %v480_v59  ;;  %v486_v50 = vadd.s32 %v480_v59, %v476_v56  ;;  %v498_v13 = vmul.u32 %v496_v48, %v472_v55 }
  0xb8   :  { %vm579_vm4 = vcmp.lt.s32.totalorder %v3276_v31, 0  ;;  %v3477_v18 = vsub.s32 %v675_v21, %v678_v57  ;;  %v459_v34 = vsel %vm455_vm15, %v439_v54, %v442_v41  ;;  %v485_v19 = vsel %vm484_vm3, 1, %v3149_v4 }
  0xb9   :  { %v500_v30 = vmul.u32 %v496_v48, %v473_v9  ;;  %v461_v45 = vsel %vm457_vm1, %v3419_v43, %v460_v61  ;;  %v487_v22 = vadd.s32 %v485_v19, %v479_v62  ;;  %vm488_vm5 = vc.u32 %v486_v50, %v482_v44 }
  0xba   :  { %vm506_vm6 = vc.u32 %v498_v13, %v502_v12  ;;  %v3485_v24 = vshrl.u32 %v2054_v53, 5  ;;  %v3027_v55 = vadd.s32 4294967169, %v1892_v51  ;;  %vm680_vm7 = vcmp.lt.s32.totalorder %v3477_v18, 0 }
  0xbb   :  { %v681_v21 = vsub.s32 0, %v3477_v18  ;;  %v489_v17 = vsel %vm488_vm5, 1, %v3149_v4  ;;  %v501_v41 = vmul.u32 %v497_v28, %v473_v9  ;;  %v507_v27 = vsel %vm506_vm6, 1, %v3149_v4 }
  0xbc   :  { %v508_v3 = vadd.s32 %v502_v12, %v498_v13  ;;  %v462_v43 = vsel %vm456_vm2, %v459_v34, %v461_v45  ;;  %v481_v54 = vshrl.u32 %v477_v40, 16  ;;  %v504_v56 = vshll.u32 %v500_v30, 16 }
  0xbd   :  { %v682_v48 = vsel %vm680_vm7, %v681_v21, %v3477_v18  ;;  %v701_v57 = vsub.s32 4, %v677_v25  ;;  %v491_v51 = vadd.s32 %v489_v17, %v487_v22  ;;  %v509_v61 = vadd.s32 %v507_v27, %v501_v41 }
  0xbe   :  { %v683_v59 = vclz %v682_v48  ;;  %v3495_v62 = vsub.s32 32, %v3467_v49  ;;  %v3497_v44 = vand.u32 31, %v2054_v53  ;;  %v3499_v9 = vadd.s32 1, %v3027_v55 }
  0xbf   :  { %vm510_vm8 = vc.u32 %v508_v3, %v504_v56  ;;  %v483_v12 = vshrl.u32 %v478_v47, 16  ;;  %v492_v50 = vadd.s32 %v491_v51, %v481_v54  ;;  %v671_v40 = vadd.s32 %v3417_v32, %v3415_v39 }
  0xc0   :  { %v2995_v28 = vadd.s32 4294967294, %v683_v59  ;;  %v511_v7 = vsel %vm510_vm8, 1, %v3149_v4  ;;  %v503_v13 = vshrl.u32 %v499_v8, 16  ;;  %v516_v19 = vmul.u32 %v3374_v5, %v462_v43 }
  0xc1   :  { %v513_v34 = vadd.s32 %v511_v7, %v509_v61  ;;  %vm3507_vm9 = vcmp.le.f32.partialorder %v577_v52, 0.7853982  ;;  %v702_v47 = vsel %vm579_vm4, %v701_v57, %v677_v25  ;;  %v3513_v45 = vadd.s32 %v492_v50, %v483_v12  ;;  %v1535_v57 = vpop.permute.xlu1 %1534 }
  0xc2   :  { %vm2996_vm10 = vcmp.lt.s32.totalorder %v2995_v28, 0  ;;  %v505_v22 = vshrl.u32 %v500_v30, 16  ;;  %v3515_v21 = vadd.s32 %v508_v3, %v504_v56  ;;  %v276_v5 = vand.u32 8388607, %v269_v36 }
  0xc3   :  { %v686_v55 = vsel %vm2996_vm10, 0, %v2995_v28  ;;  %v514_v39 = vadd.s32 %v513_v34, %v503_v13  ;;  %v286_v52 = vshll.u32 %v3154_v11, %v3318_v29  ;;  %v289_v17 = vshll.u32 %v3150_v58, %v3318_v29 }
  0xc4   :  { %v687_v32 = vsub.s32 32, %v686_v55  ;;  %v691_v8 = vsub.s32 4294967266, %v686_v55  ;;  %v688_v25 = vshll.u32 %v3477_v18, %v686_v55  ;;  %vm518_vm11 = vc.u32 %v3513_v45, %v3515_v21 }
  0xc5   :  { %v515_v41 = vadd.s32 %v514_v39, %v505_v22  ;;  %v290_v30 = vshrl.u32 %v3151_v60, %v3363_v1  ;;  %v292_v48 = vshll.u32 %v3151_v60, %v3318_v29  ;;  %v293_v43 = vshrl.u32 %v3152_v63, %v3363_v1 }
  0xc6   :  { %v689_v27 = vshrl.u32 %v671_v40, %v687_v32  ;;  %v692_v3 = vadd.s32 127, %v691_v8  ;;  %v295_v56 = vshll.u32 %v3152_v63, %v3318_v29  ;;  %v296_v18 = vshrl.u32 %v3153_v2, %v3363_v1 }
  0xc7   :  { %v519_v54 = vadd.s32 1, %v515_v41  ;;  %v298_v59 = vshll.u32 %v3153_v2, %v3318_v29  ;;  %v287_v28 = vshrl.u32 %v3150_v58, %v3363_v1  ;;  %v299_v12 = vshrl.u32 %v3155_v20, %v3363_v1 }
  0xc8   :  { %v690_v51 = vor.u32 %v689_v27, %v688_v25  ;;  %v693_v61 = vshll.u32 %v692_v3, 23  ;;  %v277_v7 = vor.u32 8388608, %v276_v5  ;;  %v291_v40 = vor.u32 %v290_v30, %v289_v17 }
  0xc9   :  { %v520_v50 = vsel %vm518_vm11, %v519_v54, %v515_v41  ;;  %v294_v13 = vor.u32 %v293_v43, %v292_v48  ;;  %v300_v55 = vor.u32 %v299_v12, %v298_v59  ;;  %vm301_vm12 = vcmp.lt.s32.totalorder %v3360_v0, 1 }
  0xca   :  { %v694_v34 = vor.u32 4788187, %v693_v61  ;;  %v521_v22 = vadd.s32 %v520_v50, %v516_v19  ;;  %v1552_v29 = vmul.f32 %v1535_v57, %v3264_v16  ;;  %v704_v39 = vsel %vm3507_vm9, 0, %v702_v47 }
  0xcb   :  { %v297_v32 = vor.u32 %v296_v18, %v295_v56  ;;  %vm304_vm13 = vcmp.lt.s32.totalorder %v3360_v0, 4  ;;  %v697_v25 = vcvt.s32.f32 %v690_v51  ;;  %vm303_vm14 = vcmp.lt.s32.totalorder %v3360_v0, 3 }
  0xcc   :  { %v695_v8 = vand.u32 2147483647, %v694_v34  ;;  %v522_v27 = vadd.s32 536870912, %v521_v22  ;;  %vm302_vm15 = vcmp.lt.s32.totalorder %v3360_v0, 2  ;;  %v313_v19 = vsel %vm301_vm12, %v291_v40, %v294_v13 }
  0xcd   :  { %v314_v5 = vsel %vm304_vm13, %v300_v55, 1326507024  ;;  %v3553_v16 = vshll.u32 %v277_v7, 8  ;;  %vm1899_vm0 = vcmp.gt.s32.totalorder %v3499_v9, 0  ;;  %v288_v41 = vor.u32 %v287_v28, %v286_v52 }
  0xce   :  { %v698_v47 = vmul.f32 %v697_v25, %v695_v8  ;;  %v3556_v17 = vshrl.u32 %v522_v27, 30  ;;  %v3559_v30 = vadd.f32 %v3368_v6, %v1552_v29  ;;  %v310_v3 = vsel %vm304_vm13, %v297_v32, 920167782 }
  0xcf   :  { %v315_v48 = vsel %vm303_vm14, %v297_v32, %v314_v5  ;;  %v3566_v43 = vand.u32 65535, %v3553_v16  ;;  %v1340_v56 = vadd.s32 3, %v704_v39  ;;  %v3572_v52 = vsel %vm1899_vm0, %v3499_v9, 0 }
  0xd0   :  { %v699_v54 = vxor.u32 2147483648, %v698_v47  ;;  %v524_v18 = vshll.u32 %v3556_v17, 30  ;;  %v316_v59 = vsel %vm302_vm15, %v313_v19, %v315_v48  ;;  %v3575_v6 = vshrl.u32 %v3553_v16, 16 }
  0xd1   :  { %v320_v57 = vand.u32 65535, %v316_v59  ;;  %v321_v51 = vshrl.u32 %v316_v59, 16  ;;  %v309_v12 = vsel %vm301_vm12, %v288_v41, %v291_v40  ;;  %v311_v50 = vsel %vm303_vm14, %v294_v13, %v310_v3 }
  0xd2   :  { %v700_v61 = vsel %vm579_vm4, %v699_v54, %v698_v47  ;;  %v3579_v28 = vsub.s32 %v521_v22, %v524_v18  ;;  %v3590_v7 = vand.u32 3, %v704_v39  ;;  %v285_v34 = vshrl.u32 %v3154_v11, %v3363_v1 }
  0xd3   :  { %v3588_v9 = vsel %vm3507_vm9, %v3276_v31, %v700_v61  ;;  %v3595_v55 = vmul.u32 %v321_v51, %v3566_v43  ;;  %v3599_v29 = vand.u32 3, %v1340_v56  ;;  %v306_v53 = vsel %vm304_vm13, %v294_v13, 2102212464 }
  0xd4   :  { %v705_v22 = vmul.f32 %v3588_v9, %v3588_v9  ;;  %vm526_vm1 = vcmp.lt.s32.totalorder %v3579_v28, 0  ;;  %v527_v32 = vsub.s32 0, %v3579_v28  ;;  %v312_v39 = vsel %vm302_vm15, %v309_v12, %v311_v50 }
  0xd5   :  { %v322_v1 = vmul.u32 %v320_v57, %v3566_v43  ;;  %v3609_v8 = vmul.u32 %v320_v57, %v3575_v6  ;;  %v326_v5 = vshll.u32 %v3595_v55, 16  ;;  %vm425_vm2 = vcmp.lt.s32.totalorder %v3280_v35, 0 }
  0xd6   :  { %v706_v25 = vmul.f32 -0.001358992, %v705_v22  ;;  %v713_v27 = vmul.f32 -0.00019511016, %v705_v22  ;;  %v528_v19 = vsel %vm526_vm1, %v527_v32, %v3579_v28  ;;  %v517_v47 = vadd.s32 %v3515_v21, %v3513_v45 }
  0xd7   :  { %v529_v13 = vclz %v528_v19  ;;  %v305_v3 = vsel %vm301_vm12, %v285_v34, %v288_v41  ;;  %v342_v48 = vand.u32 65535, %v312_v39  ;;  %v307_v18 = vsel %vm303_vm14, %v291_v40, %v306_v53 }
  0xd8   :  { %v707_v54 = vadd.f32 0.041655596, %v706_v25  ;;  %v714_v56 = vadd.f32 0.008332121, %v713_v27  ;;  %v325_v59 = vmul.u32 %v321_v51, %v3575_v6  ;;  %v547_v61 = vsub.s32 4, %v3556_v17 }
  0xd9   :  { %v2992_v57 = vadd.s32 4294967294, %v529_v13  ;;  %v328_v12 = vshll.u32 %v3609_v8, 16  ;;  %v343_v50 = vshrl.u32 %v312_v39, 16  ;;  %v327_v21 = vshrl.u32 %v3595_v55, 16 }
  0xda   :  { %v708_v32 = vmul.f32 %v707_v54, %v705_v22  ;;  %v715_v45 = vmul.f32 %v714_v56, %v705_v22  ;;  %vm330_vm3 = vc.u32 %v322_v1, %v326_v5  ;;  %vm3626_vm4 = vcmp.le.f32.partialorder %v423_v14, 0.7853982 }
  0xdb   :  { %vm2993_vm5 = vcmp.lt.s32.totalorder %v2992_v57, 0  ;;  %v331_v40 = vsel %vm330_vm3, 1, %v3149_v4  ;;  %v332_v51 = vadd.s32 %v326_v5, %v322_v1  ;;  %v344_v34 = vmul.u32 %v342_v48, %v3566_v43 }
  0xdc   :  { %v709_v53 = vadd.f32 -0.4999988, %v708_v32  ;;  %v716_v25 = vadd.f32 -0.16666654, %v715_v45  ;;  %v532_v39 = vsel %vm2993_vm5, 0, %v2992_v57  ;;  %v333_v27 = vadd.s32 %v331_v40, %v325_v59 }
  0xdd   :  { %vm1343_vm6 = vcmp.eq.s32.totalorder %v3599_v29, 0  ;;  %vm723_vm7 = vcmp.eq.s32.totalorder %v3590_v7, 0  ;;  %vm726_vm8 = vcmp.eq.s32.totalorder %v3590_v7, 2  ;;  %v533_v14 = vsub.s32 32, %v532_v39 }
  0xde   :  { %v534_v55 = vshll.u32 %v3579_v28, %v532_v39  ;;  %v537_v19 = vsub.s32 4294967266, %v532_v39  ;;  %vm334_vm9 = vc.u32 %v332_v51, %v328_v12  ;;  %v710_v13 = vmul.f32 %v709_v53, %v705_v22 }
  0xdf   :  { %v717_v54 = vmul.f32 %v716_v25, %v705_v22  ;;  %vm1342_vm10 = vcmp.lt.s32.totalorder %v3599_v29, 2  ;;  %vm722_vm11 = vcmp.lt.s32.totalorder %v3590_v7, 2  ;;  %v335_v1 = vsel %vm334_vm9, 1, %v3149_v4 }
  0xe0   :  { %v345_v5 = vmul.u32 %v343_v50, %v3566_v43  ;;  %vm720_vm12 = vweird.f32 %v3276_v31  ;;  %v535_v56 = vshrl.u32 %v517_v47, %v533_v14  ;;  %v538_v59 = vadd.s32 127, %v537_v19 }
  0xe1   :  { %v337_v57 = vadd.s32 %v335_v1, %v333_v27  ;;  %v346_v32 = vmul.u32 %v342_v48, %v3575_v6  ;;  %v711_v28 = vadd.f32 1.0, %v710_v13  ;;  %v718_v45 = vadd.f32 1.0, %v717_v54 }
  0xe2   :  { %v548_v22 = vsel %vm425_vm2, %v547_v61, %v3556_v17  ;;  %v348_v12 = vshll.u32 %v345_v5, 16  ;;  %v536_v40 = vor.u32 %v535_v56, %v534_v55  ;;  %v539_v51 = vshll.u32 %v538_v59, 23 }
  0xe3   :  { %v338_v53 = vadd.s32 %v337_v57, %v327_v21  ;;  %v347_v25 = vmul.u32 %v343_v50, %v3575_v6  ;;  %v719_v43 = vmul.f32 %v718_v45, %v3588_v9  ;;  %v727_v39 = vxor.u32 2147483648, %v711_v28 }
  0xe4   :  { %vm1346_vm13 = vcmp.eq.s32.totalorder %v3599_v29, 2  ;;  %v3650_v47 = vsel %vm302_vm15, %v305_v3, %v307_v18  ;;  %v540_v48 = vor.u32 4788187, %v539_v51  ;;  %v329_v27 = vshrl.u32 %v3609_v8, 16 }
  0xe5   :  { %v350_v14 = vshll.u32 %v346_v32, 16  ;;  %vm352_vm14 = vc.u32 %v344_v34, %v348_v12  ;;  %v724_v17 = vxor.u32 2147483648, %v719_v43  ;;  %v543_v61 = vcvt.s32.f32 %v536_v40 }
  0xe6   :  { %v550_v21 = vsel %vm3626_vm4, 0, %v548_v22  ;;  %v353_v6 = vsel %vm352_vm14, 1, %v3149_v4  ;;  %v541_v9 = vand.u32 2147483647, %v540_v48  ;;  %v3656_v50 = vadd.s32 %v338_v53, %v329_v27 }
  0xe7   :  { %v354_v55 = vadd.s32 %v348_v12, %v344_v34  ;;  %v355_v19 = vadd.s32 %v353_v6, %v347_v25  ;;  %v1345_v0 = vsel %vm1343_vm6, %v711_v28, %v724_v17  ;;  %v1348_v3 = vsel %vm1346_vm13, %v727_v39, %v719_v43 }
  0xe8   :  { %v725_v8 = vsel %vm723_vm7, %v711_v28, %v724_v17  ;;  %v728_v18 = vsel %vm726_vm8, %v727_v39, %v719_v43  ;;  %v1349_v13 = vsel %vm1342_vm10, %v1345_v0, %v1348_v3  ;;  %v544_v1 = vmul.f32 %v543_v61, %v541_v9 }
  0xe9   :  { %v729_v54 = vsel %vm722_vm11, %v725_v8, %v728_v18  ;;  %vm356_vm15 = vc.u32 %v354_v55, %v350_v14  ;;  %v1350_v34 = vsel %vm720_vm12, nan, %v1349_v13  ;;  %v115_v57 = vand.u32 2147483647, %v3287_v46 }
  0xea   :  { %v730_v56 = vsel %vm720_vm12, nan, %v729_v54  ;;  %v357_v59 = vsel %vm356_vm15, 1, %v3149_v4  ;;  %v3675_v28 = vsub.s32 32, %v3497_v44  ;;  %1376 = vmatpush.msra.mxu0 %v1350_v34  ;;  %3059 = vmatpush.msra.mxu2 %v1350_v34  ;;  %v545_v29 = vxor.u32 2147483648, %v544_v1 }
  0xeb   :  { %v349_v7 = vshrl.u32 %v345_v5, 16  ;;  %v359_v45 = vadd.s32 %v357_v59, %v355_v19  ;;  %v3678_v22 = vand.u32 31, %v3572_v52  ;;  %v1583_v12 = vand.u32 2139095040, %v3559_v30  ;;  %1417 = vmatpush.msra.mxu1 %v730_v56  ;;  %3063 = vmatpush.msra.mxu3 %v730_v56 }
  0xec   :  { %v3681_v31 = vadd.s32 %v354_v55, %v350_v14  ;;  %v362_v40 = vmul.u32 %v3553_v16, %v3650_v47  ;;  %v546_v51 = vsel %vm425_vm2, %v545_v29, %v544_v1  ;;  %v1185_v53 = vadd.s32 3, %v550_v21 }
  0xed   :  { %v351_v25 = vshrl.u32 %v346_v32, 16  ;;  %v360_v43 = vadd.s32 %v359_v45, %v349_v7  ;;  %v549_v5 = vsel %vm3626_vm4, %v3280_v35, %v546_v51  ;;  %v122_v39 = vand.u32 8388607, %v115_v57 }
  0xee   :  { %vm364_vm0 = vc.u32 %v3656_v50, %v3681_v31  ;;  %v136_v48 = vshrl.u32 %v3151_v60, %v3462_v33  ;;  %v551_v16 = vmul.f32 %v549_v5, %v549_v5  ;;  %v132_v27 = vshll.u32 %v3154_v11, %v3380_v26 }
  0xef   :  { %v361_v47 = vadd.s32 %v360_v43, %v351_v25  ;;  %v139_v32 = vshrl.u32 %v3152_v63, %v3462_v33  ;;  %v133_v41 = vshrl.u32 %v3150_v58, %v3462_v33  ;;  %v135_v14 = vshll.u32 %v3150_v58, %v3380_v26 }
  0xf0   :  { %v138_v17 = vshll.u32 %v3151_v60, %v3380_v26  ;;  %v142_v61 = vshrl.u32 %v3153_v2, %v3462_v33  ;;  %v552_v6 = vmul.f32 -0.001358992, %v551_v16  ;;  %v559_v9 = vmul.f32 -0.00019511016, %v551_v16 }
  0xf1   :  { %v365_v55 = vadd.s32 1, %v361_v47  ;;  %v141_v19 = vshll.u32 %v3152_v63, %v3380_v26  ;;  %v3710_v0 = vor.u32 %v136_v48, %v135_v14  ;;  %v144_v8 = vshll.u32 %v3153_v2, %v3380_v26 }
  0xf2   :  { %v140_v3 = vor.u32 %v139_v32, %v138_v17  ;;  %v145_v18 = vshrl.u32 %v3155_v20, %v3462_v33  ;;  %v553_v13 = vadd.f32 0.041655596, %v552_v6  ;;  %v560_v54 = vadd.f32 0.008332121, %v559_v9 }
  0xf3   :  { %v366_v1 = vsel %vm364_vm0, %v365_v55, %v361_v47  ;;  %v143_v34 = vor.u32 %v142_v61, %v141_v19  ;;  %v3719_v56 = vshrl.u32 %v1583_v12, 23  ;;  %v567_v59 = vand.u32 3, %v550_v21 }
  0xf4   :  { %v367_v29 = vadd.s32 %v366_v1, %v362_v40  ;;  %v146_v7 = vor.u32 %v145_v18, %v144_v8  ;;  %v554_v45 = vmul.f32 %v553_v13, %v551_v16  ;;  %v561_v51 = vmul.f32 %v560_v54, %v551_v16 }
  0xf5   :  { %v1186_v25 = vand.u32 3, %v1185_v53  ;;  %v3721_v43 = vor.u32 %v133_v41, %v132_v27  ;;  %v123_v48 = vor.u32 8388608, %v122_v39  ;;  %vm147_vm1 = vcmp.lt.s32.totalorder %v3459_v15, 1 }
  0xf6   :  { %v368_v26 = vadd.s32 536870912, %v367_v29  ;;  %vm150_vm2 = vcmp.lt.s32.totalorder %v3459_v15, 4  ;;  %v555_v32 = vadd.f32 -0.4999988, %v554_v45  ;;  %v562_v14 = vadd.f32 -0.16666654, %v561_v51 }
  0xf7   :  { %v156_v12 = vsel %vm150_vm2, %v143_v34, 920167782  ;;  %v159_v21 = vsel %vm147_vm1, %v3710_v0, %v140_v3  ;;  %vm148_vm3 = vcmp.lt.s32.totalorder %v3459_v15, 2  ;;  %vm149_vm4 = vcmp.lt.s32.totalorder %v3459_v15, 3 }
  0xf8   :  { %v3730_v40 = vshrl.u32 %v368_v26, 30  ;;  %v160_v53 = vsel %vm150_vm2, %v146_v7, 1326507024  ;;  %v556_v39 = vmul.f32 %v555_v32, %v551_v16  ;;  %v563_v47 = vmul.f32 %v562_v14, %v551_v16 }
  0xf9   :  { %v155_v27 = vsel %vm147_vm1, %v3721_v43, %v3710_v0  ;;  %v161_v41 = vsel %vm149_vm4, %v143_v34, %v160_v53  ;;  %v157_v61 = vsel %vm149_vm4, %v140_v3, %v156_v12  ;;  %v3747_v9 = vshll.u32 %v123_v48, 8 }
  0xfa   :  { %v370_v17 = vshll.u32 %v3730_v40, 30  ;;  %v162_v6 = vsel %vm148_vm3, %v159_v21, %v161_v41  ;;  %v557_v55 = vadd.f32 1.0, %v556_v39  ;;  %v564_v16 = vadd.f32 1.0, %v563_v47 }
  0xfb   :  { %vm566_vm5 = vweird.f32 %v3280_v35  ;;  %vm568_vm6 = vcmp.lt.s32.totalorder %v567_v59, 2  ;;  %vm569_vm7 = vcmp.eq.s32.totalorder %v567_v59, 0  ;;  %vm572_vm8 = vcmp.eq.s32.totalorder %v567_v59, 2 }
  0xfc   :  { %v3750_v19 = vsub.s32 %v367_v29, %v370_v17  ;;  %v167_v8 = vshrl.u32 %v162_v6, 16  ;;  %v565_v18 = vmul.f32 %v564_v16, %v549_v5  ;;  %v573_v13 = vxor.u32 2147483648, %v557_v55 }
  0xfd   :  { %vm1187_vm9 = vcmp.lt.s32.totalorder %v1186_v25, 2  ;;  %v158_v54 = vsel %vm148_vm3, %v155_v27, %v157_v61  ;;  %vm1188_vm10 = vcmp.eq.s32.totalorder %v1186_v25, 0  ;;  %v164_v34 = vand.u32 65535, %v3747_v9 }
  0xfe   :  { %vm372_vm11 = vcmp.lt.s32.totalorder %v3750_v19, 0  ;;  %v373_v1 = vsub.s32 0, %v3750_v19  ;;  %v570_v7 = vxor.u32 2147483648, %v565_v18  ;;  %vm1191_vm12 = vcmp.eq.s32.totalorder %v1186_v25, 2 }
  0xff   :  { %v152_v29 = vsel %vm150_vm2, %v140_v3, 2102212464  ;;  %v166_v45 = vand.u32 65535, %v162_v6  ;;  %v1193_v51 = vsel %vm1191_vm12, %v573_v13, %v565_v18  ;;  %v169_v26 = vmul.u32 %v167_v8, %v164_v34 }
 0x100   :  { %v374_v5 = vsel %vm372_vm11, %v373_v1, %v3750_v19  ;;  %v189_v48 = vshrl.u32 %v158_v54, 16  ;;  %v1190_v32 = vsel %vm1188_vm10, %v557_v55, %v570_v7  ;;  %v571_v14 = vsel %vm569_vm7, %v557_v55, %v570_v7 }
 0x101   :  { %v574_v12 = vsel %vm572_vm8, %v573_v13, %v565_v18  ;;  %v375_v21 = vclz %v374_v5  ;;  %v1194_v53 = vsel %vm1187_vm9, %v1190_v32, %v1193_v51  ;;  %v165_v47 = vshrl.u32 %v3747_v9, 16 }
 0x102   :  { %v575_v39 = vsel %vm568_vm6, %v571_v14, %v574_v12  ;;  %v188_v27 = vand.u32 65535, %v158_v54  ;;  %v1195_v3 = vsel %vm566_vm5, nan, %v1194_v53  ;;  %v363_v41 = vadd.s32 %v3681_v31, %v3656_v50 }
 0x103   :  { %v2989_v17 = vadd.s32 4294967294, %v375_v21  ;;  %v131_v61 = vshrl.u32 %v3154_v11, %v3462_v33  ;;  %1377 = vmatpush.msra.mxu0 %v1195_v3  ;;  %3060 = vmatpush.msra.mxu2 %v1195_v3  ;;  %v576_v25 = vsel %vm566_vm5, nan, %v575_v39  ;;  %v168_v59 = vmul.u32 %v166_v45, %v164_v34 }
 0x104   :  { %v170_v6 = vmul.u32 %v166_v45, %v165_v47  ;;  %v172_v55 = vshll.u32 %v169_v26, 16  ;;  %1418 = vmatpush.msra.mxu1 %v576_v25  ;;  %3064 = vmatpush.msra.mxu3 %v576_v25  ;;  %v153_v50 = vsel %vm149_vm4, %v3710_v0, %v152_v29  ;;  %v191_v33 = vmul.u32 %v189_v48, %v164_v34 }
 0x105   :  { %vm2990_vm13 = vcmp.lt.s32.totalorder %v2989_v17, 0  ;;  %v151_v16 = vsel %vm147_vm1, %v131_v61, %v3721_v43  ;;  %v171_v18 = vmul.u32 %v167_v8, %v165_v47  ;;  %v192_v35 = vmul.u32 %v188_v27, %v165_v47 }
 0x106   :  { %v378_v31 = vsel %vm2990_vm13, 0, %v2989_v17  ;;  %vm176_vm14 = vc.u32 %v168_v59, %v172_v55  ;;  %v190_v7 = vmul.u32 %v188_v27, %v164_v34  ;;  %v174_v45 = vshll.u32 %v170_v6, 16 }
 0x107   :  { %v379_v13 = vsub.s32 32, %v378_v31  ;;  %v383_v54 = vsub.s32 4294967266, %v378_v31  ;;  %v177_v1 = vsel %vm176_vm14, 1, %v3149_v4  ;;  %v178_v51 = vadd.s32 %v172_v55, %v168_v59 }
 0x108   :  { %v179_v5 = vadd.s32 %v177_v1, %v171_v18  ;;  %v194_v32 = vshll.u32 %v191_v33, 16  ;;  %v380_v43 = vshll.u32 %v3750_v19, %v378_v31  ;;  %v193_v21 = vmul.u32 %v189_v48, %v165_v47 }
 0x109   :  { %v381_v14 = vshrl.u32 %v363_v41, %v379_v13  ;;  %v384_v12 = vadd.s32 127, %v383_v54  ;;  %vm180_vm15 = vc.u32 %v178_v51, %v174_v45  ;;  %v196_v0 = vshll.u32 %v192_v35, 16 }
 0x10a   :  { %vm198_vm0 = vc.u32 %v190_v7, %v194_v32  ;;  %v200_v8 = vadd.s32 %v194_v32, %v190_v7  ;;  %v181_v39 = vsel %vm180_vm15, 1, %v3149_v4  ;;  %v173_v34 = vshrl.u32 %v169_v26, 16 }
 0x10b   :  { %v382_v29 = vor.u32 %v381_v14, %v380_v43  ;;  %v385_v53 = vshll.u32 %v384_v12, 23  ;;  %v199_v3 = vsel %vm198_vm0, 1, %v3149_v4  ;;  %v183_v27 = vadd.s32 %v181_v39, %v179_v5 }
 0x10c   :  { %v201_v17 = vadd.s32 %v199_v3, %v193_v21  ;;  %vm202_vm1 = vc.u32 %v200_v8, %v196_v0  ;;  %v3784_v61 = vsub.s32 32, %v3678_v22  ;;  %v393_v48 = vsub.s32 4, %v3730_v40 }
 0x10d   :  { %v386_v19 = vor.u32 4788187, %v385_v53  ;;  %v203_v47 = vsel %vm202_vm1, 1, %v3149_v4  ;;  %v175_v41 = vshrl.u32 %v170_v6, 16  ;;  %v184_v25 = vadd.s32 %v183_v27, %v173_v34 }
 0x10e   :  { %v195_v59 = vshrl.u32 %v191_v33, 16  ;;  %v205_v55 = vadd.s32 %v203_v47, %v201_v17  ;;  %v389_v18 = vcvt.s32.f32 %v382_v29  ;;  %v154_v26 = vsel %vm148_vm3, %v151_v16, %v153_v50 }
 0x10f   :  { %v387_v31 = vand.u32 2147483647, %v386_v19  ;;  %v2042_v13 = vand.u32 2147483647, %v3336_v42  ;;  %v3021_v54 = vadd.s32 4294967169, %v3719_v56  ;;  %v3792_v1 = vadd.s32 %v184_v25, %v175_v41 }
 0x110   :  { %v197_v7 = vshrl.u32 %v192_v35, 16  ;;  %v206_v45 = vadd.s32 %v205_v55, %v195_v59  ;;  %vm3796_vm2 = vcmp.le.f32.partialorder %v269_v36, 0.7853982  ;;  %vm271_vm4 = vcmp.lt.s32.totalorder %v3270_v23, 0 }
 0x111   :  { %v390_v33 = vmul.f32 %v389_v18, %v387_v31  ;;  %v3801_v51 = vadd.s32 %v200_v8, %v196_v0  ;;  %v394_v15 = vsel %vm271_vm4, %v393_v48, %v3730_v40  ;;  %v208_v56 = vmul.u32 %v3747_v9, %v154_v26 }
 0x112   :  { %v207_v16 = vadd.s32 %v206_v45, %v197_v7  ;;  %v2063_v50 = vshrl.u32 %v3151_v60, %v3675_v28  ;;  %v2049_v36 = vand.u32 8388607, %v2042_v13  ;;  %v2060_v5 = vshrl.u32 %v3150_v58, %v3675_v28 }
 0x113   :  { %v391_v35 = vxor.u32 2147483648, %v390_v33  ;;  %vm210_vm3 = vc.u32 %v3792_v1, %v3801_v51  ;;  %v2062_v40 = vshll.u32 %v3150_v58, %v3497_v44  ;;  %v2066_v9 = vshrl.u32 %v3152_v63, %v3675_v28 }
 0x114   :  { %v211_v32 = vadd.s32 1, %v207_v16  ;;  %v2069_v43 = vshrl.u32 %v3153_v2, %v3675_v28  ;;  %v2065_v12 = vshll.u32 %v3151_v60, %v3497_v44  ;;  %v2071_v21 = vshll.u32 %v3153_v2, %v3497_v44 }
 0x115   :  { %v392_v14 = vsel %vm271_vm4, %v391_v35, %v390_v33  ;;  %v2072_v0 = vshrl.u32 %v3155_v20, %v3675_v28  ;;  %v3828_v53 = vor.u32 %v2063_v50, %v2062_v40  ;;  %v2068_v39 = vshll.u32 %v3152_v63, %v3497_v44 }
 0x116   :  { %v395_v8 = vsel %vm3796_vm2, %v3270_v23, %v392_v14  ;;  %v212_v29 = vsel %vm210_vm3, %v211_v32, %v207_v16  ;;  %v3832_v27 = vor.u32 %v2066_v9, %v2065_v12  ;;  %v396_v19 = vsel %vm3796_vm2, 0, %v394_v15 }
 0x117   :  { %v397_v3 = vmul.f32 %v395_v8, %v395_v8  ;;  %v213_v34 = vadd.s32 %v212_v29, %v208_v56  ;;  %v2073_v17 = vor.u32 %v2072_v0, %v2071_v21  ;;  %v2050_v48 = vor.u32 8388608, %v2049_v36 }
 0x118   :  { %v2059_v47 = vshll.u32 %v3154_v11, %v3497_v44  ;;  %v2070_v41 = vor.u32 %v2069_v43, %v2068_v39  ;;  %vm2077_vm5 = vcmp.lt.s32.totalorder %v3485_v24, 4  ;;  %vm2074_vm6 = vcmp.lt.s32.totalorder %v3485_v24, 1 }
 0x119   :  { %v398_v25 = vmul.f32 -0.001358992, %v397_v3  ;;  %v405_v59 = vmul.f32 -0.00019511016, %v397_v3  ;;  %v214_v55 = vadd.s32 536870912, %v213_v34  ;;  %vm2076_vm7 = vcmp.lt.s32.totalorder %v3485_v24, 3 }
 0x11a   :  { %v3839_v31 = vor.u32 %v2060_v5, %v2059_v47  ;;  %v2087_v18 = vsel %vm2077_vm5, %v2073_v17, 1326507024  ;;  %v2086_v44 = vsel %vm2074_vm6, %v3828_v53, %v3832_v27  ;;  %v1030_v6 = vadd.s32 3, %v396_v19 }
 0x11b   :  { %v399_v26 = vadd.f32 0.041655596, %v398_v25  ;;  %v406_v7 = vadd.f32 0.008332121, %v405_v59  ;;  %v3845_v45 = vshrl.u32 %v214_v55, 30  ;;  %v2088_v15 = vsel %vm2076_vm7, %v2070_v41, %v2087_v18 }
 0x11c   :  { %v2083_v33 = vsel %vm2077_vm5, %v2070_v41, 920167782  ;;  %v3855_v16 = vshll.u32 %v2050_v48, 8  ;;  %vm2075_vm8 = vcmp.lt.s32.totalorder %v3485_v24, 2  ;;  %v3859_v36 = vadd.s32 1, %v3021_v54 }
 0x11d   :  { %v400_v56 = vmul.f32 %v399_v26, %v397_v3  ;;  %v407_v50 = vmul.f32 %v406_v7, %v397_v3  ;;  %v216_v35 = vshll.u32 %v3845_v45, 30  ;;  %v413_v5 = vand.u32 3, %v396_v19 }
 0x11e   :  { %v2082_v32 = vsel %vm2074_vm6, %v3839_v31, %v3828_v53  ;;  %v2089_v40 = vsel %vm2075_vm8, %v2086_v44, %v2088_v15  ;;  %v2084_v12 = vsel %vm2076_vm7, %v3832_v27, %v2083_v33  ;;  %v1031_v21 = vand.u32 3, %v1030_v6 }
 0x11f   :  { %v401_v9 = vadd.f32 -0.4999988, %v400_v56  ;;  %v408_v43 = vadd.f32 -0.16666654, %v407_v50  ;;  %v3867_v14 = vsub.s32 %v213_v34, %v216_v35  ;;  %v3873_v54 = vand.u32 65535, %v3855_v16 }
 0x120   :  { %v2093_v0 = vand.u32 65535, %v2089_v40  ;;  %v2094_v29 = vshrl.u32 %v2089_v40, 16  ;;  %vm412_vm10 = vweird.f32 %v3270_v23  ;;  %vm414_vm11 = vcmp.lt.s32.totalorder %v413_v5, 2 }
 0x121   :  { %v402_v39 = vmul.f32 %v401_v9, %v397_v3  ;;  %v409_v17 = vmul.f32 %v408_v43, %v397_v3  ;;  %vm218_vm9 = vcmp.lt.s32.totalorder %v3867_v14, 0  ;;  %v219_v19 = vsub.s32 0, %v3867_v14 }
 0x122   :  { %vm415_vm12 = vcmp.eq.s32.totalorder %v413_v5, 0  ;;  %v3880_v34 = vsel %vm2075_vm8, %v2082_v32, %v2084_v12  ;;  %v3883_v48 = vshrl.u32 %v3855_v16, 16  ;;  %v3887_v3 = vmul.u32 %v2094_v29, %v3873_v54 }
 0x123   :  { %v403_v47 = vadd.f32 1.0, %v402_v39  ;;  %v410_v41 = vadd.f32 1.0, %v409_v17  ;;  %v220_v25 = vsel %vm218_vm9, %v219_v19, %v3867_v14  ;;  %vm1032_vm13 = vcmp.lt.s32.totalorder %v1031_v21, 2 }
 0x124   :  { %vm418_vm14 = vcmp.eq.s32.totalorder %v413_v5, 2  ;;  %vm117_vm15 = vcmp.lt.s32.totalorder %v3287_v46, 0  ;;  %v221_v59 = vclz %v220_v25  ;;  %v3891_v55 = vmul.u32 %v2093_v0, %v3883_v48 }
 0x125   :  { %v411_v18 = vmul.f32 %v410_v41, %v395_v8  ;;  %v419_v26 = vxor.u32 2147483648, %v403_v47  ;;  %vm1033_vm0 = vcmp.eq.s32.totalorder %v1031_v21, 0  ;;  %vm1036_vm1 = vcmp.eq.s32.totalorder %v1031_v21, 2 }
 0x126   :  { %v209_v7 = vadd.s32 %v3801_v51, %v3792_v1  ;;  %v2986_v44 = vadd.s32 4294967294, %v221_v59  ;;  %v239_v6 = vsub.s32 4, %v3845_v45  ;;  %v2115_v33 = vand.u32 65535, %v3880_v34 }
 0x127   :  { %v416_v15 = vxor.u32 2147483648, %v411_v18  ;;  %v2095_v56 = vmul.u32 %v2093_v0, %v3873_v54  ;;  %v2098_v50 = vmul.u32 %v2094_v29, %v3883_v48  ;;  %v2099_v35 = vshll.u32 %v3887_v3, 16 }
 0x128   :  { %v1038_v32 = vsel %vm1036_vm1, %v419_v26, %v411_v18  ;;  %v420_v8 = vsel %vm418_vm14, %v419_v26, %v411_v18  ;;  %vm2987_vm2 = vcmp.lt.s32.totalorder %v2986_v44, 0  ;;  %v2101_v40 = vshll.u32 %v3891_v55, 16 }
 0x129   :  { %vm1591_vm4 = vcmp.gt.s32.totalorder %v3859_v36, 0  ;;  %v1035_v1 = vsel %vm1033_vm0, %v403_v47, %v416_v15  ;;  %v417_v51 = vsel %vm415_vm12, %v403_v47, %v416_v15  ;;  %v224_v9 = vsel %vm2987_vm2, 0, %v2986_v44 }
 0x12a   :  { %vm2103_vm3 = vc.u32 %v2095_v56, %v2099_v35  ;;  %v1039_v43 = vsel %vm1032_vm13, %v1035_v1, %v1038_v32  ;;  %v421_v12 = vsel %vm414_vm11, %v417_v51, %v420_v8  ;;  %v225_v0 = vsub.s32 32, %v224_v9 }
 0x12b   :  { %v226_v29 = vshll.u32 %v3867_v14, %v224_v9  ;;  %v1040_v39 = vsel %vm412_vm10, nan, %v1039_v43  ;;  %v422_v17 = vsel %vm412_vm10, nan, %v421_v12  ;;  %v229_v19 = vsub.s32 4294967266, %v224_v9 }
 0x12c   :  { %v2104_v41 = vsel %vm2103_vm3, 1, %v3149_v4  ;;  %1378 = vmatpush.msra.mxu0 %v1040_v39  ;;  %3061 = vmatpush.msra.mxu2 %v1040_v39  ;;  %v227_v47 = vshrl.u32 %v209_v7, %v225_v0  ;;  %v2105_v25 = vadd.s32 %v2099_v35, %v2095_v56  ;;  %v2116_v5 = vshrl.u32 %v3880_v34, 16 }
 0x12d   :  { %v2106_v21 = vadd.s32 %v2104_v41, %v2098_v50  ;;  %1419 = vmatpush.msra.mxu1 %v422_v17  ;;  %3065 = vmatpush.msra.mxu3 %v422_v17  ;;  %v230_v59 = vadd.s32 127, %v229_v19  ;;  %v240_v14 = vsel %vm117_vm15, %v239_v6, %v3845_v45  ;;  %v2058_v23 = vshrl.u32 %v3154_v11, %v3675_v28 }
 0x12e   :  { %v2079_v18 = vsel %vm2077_vm5, %v3832_v27, 2102212464  ;;  %v228_v26 = vor.u32 %v227_v47, %v226_v29  ;;  %vm2107_vm9 = vc.u32 %v2105_v25, %v2101_v40  ;;  %v2118_v7 = vmul.u32 %v2116_v5, %v3873_v54 }
 0x12f   :  { %v2119_v34 = vmul.u32 %v2115_v33, %v3883_v48  ;;  %vm3925_vm10 = vcmp.le.f32.partialorder %v115_v57, 0.7853982  ;;  %v231_v45 = vshll.u32 %v230_v59, 23  ;;  %v2078_v28 = vsel %vm2074_vm6, %v2058_v23, %v3839_v31 }
 0x130   :  { %v2108_v6 = vsel %vm2107_vm9, 1, %v3149_v4  ;;  %v2080_v27 = vsel %vm2076_vm7, %v3828_v53, %v2079_v18  ;;  %v2117_v56 = vmul.u32 %v2115_v33, %v3873_v54  ;;  %v2121_v50 = vshll.u32 %v2118_v7, 16 }
 0x131   :  { %v2110_v15 = vadd.s32 %v2108_v6, %v2106_v21  ;;  %v232_v35 = vor.u32 4788187, %v231_v45  ;;  %v242_v57 = vsel %vm3925_vm10, 0, %v240_v14  ;;  %v2100_v32 = vshrl.u32 %v3887_v3, 16 }
 0x132   :  { %v2120_v8 = vmul.u32 %v2116_v5, %v3883_v48  ;;  %v235_v40 = vcvt.s32.f32 %v228_v26  ;;  %v2123_v31 = vshll.u32 %v2119_v34, 16  ;;  %vm2125_vm5 = vc.u32 %v2117_v56, %v2121_v50 }
 0x133   :  { %v2127_v1 = vadd.s32 %v2121_v50, %v2117_v56  ;;  %v233_v51 = vand.u32 2147483647, %v232_v35  ;;  %v2111_v9 = vadd.s32 %v2110_v15, %v2100_v32  ;;  %v2126_v53 = vsel %vm2125_vm5, 1, %v3149_v4 }
 0x134   :  { %v1888_v43 = vand.u32 2147483647, %v3400_v37  ;;  %v3944_v54 = vshrl.u32 %v3572_v52, 5  ;;  %v3949_v33 = vsel %vm1591_vm4, %v3859_v36, 0  ;;  %v2128_v3 = vadd.s32 %v2126_v53, %v2120_v8 }
 0x135   :  { %vm2129_vm6 = vc.u32 %v2127_v1, %v2123_v31  ;;  %v236_v48 = vmul.f32 %v235_v40, %v233_v51  ;;  %v2081_v12 = vsel %vm2075_vm8, %v2078_v28, %v2080_v27  ;;  %v2102_v0 = vshrl.u32 %v3891_v55, 16 }
 0x136   :  { %v2130_v29 = vsel %vm2129_vm6, 1, %v3149_v4  ;;  %v875_v39 = vadd.s32 3, %v242_v57  ;;  %v2122_v17 = vshrl.u32 %v2118_v7, 16  ;;  %v2124_v19 = vshrl.u32 %v2119_v34, 16 }
 0x137   :  { %v2132_v52 = vadd.s32 %v2130_v29, %v2128_v3  ;;  %v237_v41 = vxor.u32 2147483648, %v236_v48  ;;  %v3955_v47 = vadd.s32 %v2111_v9, %v2102_v0  ;;  %v1895_v36 = vand.u32 8388607, %v1888_v43 }
 0x138   :  { %v1906_v25 = vshrl.u32 %v3150_v58, %v3784_v61  ;;  %v3961_v21 = vadd.s32 %v2127_v1, %v2123_v31  ;;  %v1909_v55 = vshrl.u32 %v3151_v60, %v3784_v61  ;;  %v1912_v5 = vshrl.u32 %v3152_v63, %v3784_v61 }
 0x139   :  { %v2133_v24 = vadd.s32 %v2132_v52, %v2122_v17  ;;  %v238_v59 = vsel %vm117_vm15, %v237_v41, %v236_v48  ;;  %v1908_v14 = vshll.u32 %v3150_v58, %v3678_v22  ;;  %v1911_v23 = vshll.u32 %v3151_v60, %v3678_v22 }
 0x13a   :  { %v1915_v18 = vshrl.u32 %v3153_v2, %v3784_v61  ;;  %v241_v26 = vsel %vm3925_vm10, %v3287_v46, %v238_v59  ;;  %v1917_v34 = vshll.u32 %v3153_v2, %v3678_v22  ;;  %v1918_v45 = vshrl.u32 %v3155_v20, %v3784_v61 }
 0x13b   :  { %v2134_v7 = vadd.s32 %v2133_v24, %v2124_v19  ;;  %v243_v28 = vmul.f32 %v241_v26, %v241_v26  ;;  %vm2137_vm7 = vc.u32 %v3955_v47, %v3961_v21  ;;  %v1896_v6 = vor.u32 8388608, %v1895_v36 }
 0x13c   :  { %v1914_v27 = vshll.u32 %v3152_v63, %v3678_v22  ;;  %v3986_v56 = vor.u32 %v1909_v55, %v1908_v14  ;;  %v3988_v44 = vor.u32 %v1912_v5, %v1911_v23  ;;  %v1919_v50 = vor.u32 %v1918_v45, %v1917_v34 }
 0x13d   :  { %v2138_v15 = vadd.s32 1, %v2134_v7  ;;  %v244_v35 = vmul.f32 -0.001358992, %v243_v28  ;;  %v251_v32 = vmul.f32 -0.00019511016, %v243_v28  ;;  %v3990_v8 = vand.u32 3, %v242_v57 }
 0x13e   :  { %v2135_v40 = vmul.u32 %v3855_v16, %v2081_v12  ;;  %v1905_v1 = vshll.u32 %v3154_v11, %v3678_v22  ;;  %v1916_v51 = vor.u32 %v1915_v18, %v1914_v27  ;;  %vm1920_vm8 = vcmp.lt.s32.totalorder %v3944_v54, 1 }
 0x13f   :  { %v2139_v31 = vsel %vm2137_vm7, %v2138_v15, %v2134_v7  ;;  %v245_v9 = vadd.f32 0.041655596, %v244_v35  ;;  %v252_v53 = vadd.f32 0.008332121, %v251_v32  ;;  %vm1923_vm11 = vcmp.lt.s32.totalorder %v3944_v54, 4 }
 0x140   :  { %v2140_v3 = vadd.s32 %v2139_v31, %v2135_v40  ;;  %v3997_v48 = vor.u32 %v1906_v25, %v1905_v1  ;;  %v1932_v57 = vsel %vm1920_vm8, %v3986_v56, %v3988_v44  ;;  %v1933_v16 = vsel %vm1923_vm11, %v1919_v50, 1326507024 }
 0x141   :  { %v4005_v12 = vshll.u32 %v1896_v6, 8  ;;  %v246_v22 = vmul.f32 %v245_v9, %v243_v28  ;;  %v253_v0 = vmul.f32 %v252_v53, %v243_v28  ;;  %vm1922_vm12 = vcmp.lt.s32.totalorder %v3944_v54, 3 }
 0x142   :  { %v2141_v29 = vadd.s32 536870912, %v2140_v3  ;;  %v876_v17 = vand.u32 3, %v875_v39  ;;  %vm1921_vm13 = vcmp.lt.s32.totalorder %v3944_v54, 2  ;;  %v1929_v19 = vsel %vm1923_vm11, %v1916_v51, 920167782 }
 0x143   :  { %v1934_v52 = vsel %vm1922_vm12, %v1916_v51, %v1933_v16  ;;  %v247_v41 = vadd.f32 -0.4999988, %v246_v22  ;;  %v254_v36 = vadd.f32 -0.16666654, %v253_v0  ;;  %v1928_v39 = vsel %vm1920_vm8, %v3997_v48, %v3986_v56 }
 0x144   :  { %v4013_v25 = vshrl.u32 %v2141_v29, 30  ;;  %v1935_v24 = vsel %vm1921_vm13, %v1932_v57, %v1934_v52  ;;  %v4022_v55 = vand.u32 65535, %v4005_v12  ;;  %vm260_vm14 = vcmp.lt.s32.totalorder %v3990_v8, 2 }
 0x145   :  { %v1939_v5 = vand.u32 65535, %v1935_v24  ;;  %v1940_v59 = vshrl.u32 %v1935_v24, 16  ;;  %v248_v14 = vmul.f32 %v247_v41, %v243_v28  ;;  %v255_v23 = vmul.f32 %v254_v36, %v243_v28 }
 0x146   :  { %v2143_v18 = vshll.u32 %v4013_v25, 30  ;;  %v1930_v7 = vsel %vm1922_vm12, %v3988_v44, %v1929_v19  ;;  %vm258_vm15 = vweird.f32 %v3287_v46  ;;  %vm877_vm0 = vcmp.lt.s32.totalorder %v876_v17, 2  ;;  %v4090_v46 = vld [vmem:[%s4531_s3] sm:$0xff] }
 0x147   :  { %vm261_vm1 = vcmp.eq.s32.totalorder %v3990_v8, 0  ;;  %vm264_vm2 = vcmp.eq.s32.totalorder %v3990_v8, 2  ;;  %v4033_v34 = vmul.u32 %v1940_v59, %v4022_v55  ;;  %v249_v45 = vadd.f32 1.0, %v248_v14  ;;  %v4082_v8 = vld [vmem:[%s4532_s4 + $0x18] sm:$0xff] }
 0x148   :  { %v256_v28 = vadd.f32 1.0, %v255_v23  ;;  %vm878_vm4 = vcmp.eq.s32.totalorder %v876_v17, 0  ;;  %v4035_v6 = vsub.s32 %v2140_v3, %v2143_v18  ;;  %v4039_v27 = vsel %vm1921_vm13, %v1928_v39, %v1930_v7  ;;  %v4095_v14 = vld [vmem:[%s4531_s3 + $0x18] sm:$0xff] }
 0x149   :  { %v4042_v15 = vshrl.u32 %v4005_v12, 16  ;;  %v1941_v50 = vmul.u32 %v1939_v5, %v4022_v55  ;;  %v1945_v35 = vshll.u32 %v4033_v34, 16  ;;  %v265_v40 = vxor.u32 2147483648, %v249_v45 }
 0x14a   :  { %v257_v32 = vmul.f32 %v256_v28, %v241_v26  ;;  %vm2145_vm3 = vcmp.lt.s32.totalorder %v4035_v6, 0  ;;  %v2146_v31 = vsub.s32 0, %v4035_v6  ;;  %vm881_vm9 = vcmp.eq.s32.totalorder %v876_v17, 2 }
 0x14b   :  { %vm1351_vm10 = vcmask 261120   ;;  %v1904_v1 = vshrl.u32 %v3154_v11, %v3784_v61  ;;  %vm1949_vm5 = vc.u32 %v1941_v50, %v1945_v35  ;;  %v1925_v53 = vsel %vm1923_vm11, %v3988_v44, 2102212464 }
 0x14c   :  { %v262_v51 = vxor.u32 2147483648, %v257_v32  ;;  %v2147_v9 = vsel %vm2145_vm3, %v2146_v31, %v4035_v6  ;;  %v4055_v26 = vmul.u32 %v1939_v5, %v4042_v15  ;;  %v883_v3 = vsel %vm881_vm9, %v265_v40, %v257_v32  ;;  %v4077_v5 = vld [vmem:[%s4532_s4] sm:$0xff] }
 0x14d   :  { %v2148_v57 = vclz %v2147_v9  ;;  %v1961_v16 = vand.u32 65535, %v4039_v27  ;;  %v1962_v22 = vshrl.u32 %v4039_v27, 16  ;;  %v266_v29 = vsel %vm264_vm2, %v265_v40, %v257_v32 }
 0x14e   :  { %v880_v0 = vsel %vm878_vm4, %v249_v45, %v262_v51  ;;  %v263_v61 = vsel %vm261_vm1, %v249_v45, %v262_v51  ;;  %v1950_v19 = vsel %vm1949_vm5, 1, %v3149_v4  ;;  %vm2044_vm6 = vcmp.lt.s32.totalorder %v3336_v42, 0 }
 0x14f   :  { %v884_v44 = vsel %vm877_vm0, %v880_v0, %v883_v3  ;;  %v267_v52 = vsel %vm260_vm14, %v263_v61, %v266_v29  ;;  %v3031_v41 = vadd.s32 4294967294, %v2148_v57  ;;  %v1944_v36 = vmul.u32 %v1940_v59, %v4042_v15 }
 0x150   :  { %v885_v24 = vsel %vm258_vm15, nan, %v884_v44  ;;  %v268_v39 = vsel %vm258_vm15, nan, %v267_v52  ;;  %v2136_v17 = vadd.s32 %v3961_v21, %v3955_v47  ;;  %v1947_v59 = vshll.u32 %v4055_v26, 16 }
 0x151   :  { %1379 = vmatpush.msra.mxu0 %v885_v24  ;;  %3062 = vmatpush.msra.mxu2 %v885_v24  ;;  %vm3032_vm7 = vcmp.lt.s32.totalorder %v3031_v41, 0  ;;  %v1951_v23 = vadd.s32 %v1945_v35, %v1941_v50  ;;  %v1952_v18 = vadd.s32 %v1950_v19, %v1944_v36  ;;  %v1964_v7 = vmul.u32 %v1962_v22, %v4022_v55 }
 0x152   :  { %1420 = vmatpush.msra.mxu1 %v268_v39  ;;  %3066 = vmatpush.msra.mxu3 %v268_v39  ;;  %v2151_v47 = vsel %vm3032_vm7, 0, %v3031_v41  ;;  %v1924_v21 = vsel %vm1920_vm8, %v1904_v1, %v3997_v48  ;;  %v1926_v45 = vsel %vm1922_vm12, %v3986_v56, %v1925_v53  ;;  %v1965_v28 = vmul.u32 %v1961_v16, %v4042_v15 }
 0x153   :  { %3009 = vmatmul.msk.f32.vlgmr.msra.gmra.mxu0 %vm1351_vm10, %v4077_v5  ;;  %3012 = vmatmul.msk.f32.vlgmr.msra.gmra.mxu2 %vm1351_vm10, %v4082_v8  ;;  %v2152_v27 = vsub.s32 32, %v2151_v47  ;;  %v2156_v50 = vsub.s32 4294967266, %v2151_v47  ;;  %vm1953_vm11 = vc.u32 %v1951_v23, %v1947_v59  ;;  %v1963_v35 = vmul.u32 %v1961_v16, %v4022_v55 }
 0x154   :  { %3013 = vmatmul.msk.f32.vlgmr.msra.gmra.mxu1 %vm1351_vm10, %v4090_v46  ;;  %3016 = vmatmul.msk.f32.vlgmr.msra.gmra.mxu3 %vm1351_vm10, %v4095_v14  ;;  %v2166_v56 = vsub.s32 4, %v4013_v25  ;;  %v1946_v48 = vshrl.u32 %v4033_v34, 16  ;;  %v1954_v32 = vsel %vm1953_vm11, 1, %v3149_v4  ;;  %v1967_v40 = vshll.u32 %v1964_v7, 16  ;;  %v4123_v34 = vld [vmem:[%s4532_s4 + $0x8] sm:$0xff] }
 0x155   :  { %v2153_v31 = vshll.u32 %v4035_v6, %v2151_v47  ;;  %v2154_v1 = vshrl.u32 %v2136_v17, %v2152_v27  ;;  %v2157_v51 = vadd.s32 127, %v2156_v50  ;;  %v1956_v9 = vadd.s32 %v1954_v32, %v1952_v18 }
 0x156   :  { %v1966_v55 = vmul.u32 %v1962_v22, %v4042_v15  ;;  %v1969_v53 = vshll.u32 %v1965_v28, 16  ;;  %vm1971_vm8 = vc.u32 %v1963_v35, %v1967_v40  ;;  %v1973_v3 = vadd.s32 %v1967_v40, %v1963_v35  ;;  %v4132_v22 = vld [vmem:[%s4531_s3 + $0x8] sm:$0xff]  ;;  %v4179_v40 = vld [vmem:[%s4532_s4 + $0x10] sm:$0xff] }
 0x157   :  { %v2155_v57 = vor.u32 %v2154_v1, %v2153_v31  ;;  %v2158_v16 = vshll.u32 %v2157_v51, 23  ;;  %v1957_v0 = vadd.s32 %v1956_v9, %v1946_v48  ;;  %v1972_v61 = vsel %vm1971_vm8, 1, %v3149_v4 }
 0x158   :  { %v2167_v6 = vsel %vm2044_vm6, %v2166_v56, %v4013_v25  ;;  %v1948_v29 = vshrl.u32 %v4055_v26, 16  ;;  %v1974_v15 = vadd.s32 %v1972_v61, %v1966_v55  ;;  %vm1975_vm12 = vc.u32 %v1973_v3, %v1969_v53 }
 0x159   :  { %v2159_v19 = vor.u32 4788187, %v2158_v16  ;;  %v1927_v44 = vsel %vm1921_vm13, %v1924_v21, %v1926_v45  ;;  %v1976_v52 = vsel %vm1975_vm12, 1, %v3149_v4  ;;  %v1734_v41 = vand.u32 2147483647, %v3329_v38 }
 0x15a   :  { %vm4140_vm14 = vcmp.le.f32.partialorder %v2042_v13, 0.7853982  ;;  %v4144_v26 = vadd.s32 %v1957_v0, %v1948_v29  ;;  %v1968_v36 = vshrl.u32 %v1964_v7, 16  ;;  %v1978_v24 = vadd.s32 %v1976_v52, %v1974_v15 }
 0x15b   :  { %v4147_v39 = vand.u32 31, %v3949_v33  ;;  %3010 = vmatmul.msk.f32.gmra.mxu0 %vm1351_vm10, %v4123_v34  ;;  %v2160_v54 = vand.u32 2147483647, %v2159_v19  ;;  %v2162_v17 = vcvt.s32.f32 %v2155_v57  ;;  %v2169_v59 = vsel %vm4140_vm14, 0, %v2167_v6 }
 0x15c   :  { %3014 = vmatmul.msk.f32.gmra.mxu1 %vm1351_vm10, %v4132_v22  ;;  %v1970_v13 = vshrl.u32 %v1965_v28, 16  ;;  %v4155_v23 = vadd.s32 %v1973_v3, %v1969_v53  ;;  %v1979_v18 = vadd.s32 %v1978_v24, %v1968_v36  ;;  %v1981_v7 = vmul.u32 %v4005_v12, %v1927_v44  ;;  %v4192_v53 = vld [vmem:[%s4531_s3 + $0x10] sm:$0xff] }
 0x15d   :  { %v2163_v47 = vmul.f32 %v2162_v17, %v2160_v54  ;;  %v1741_v21 = vand.u32 8388607, %v1734_v41  ;;  %v1755_v45 = vshrl.u32 %v3151_v60, %v3495_v62  ;;  %v1758_v27 = vshrl.u32 %v3152_v63, %v3495_v62 }
 0x15e   :  { %v1980_v50 = vadd.s32 %v1979_v18, %v1970_v13  ;;  %vm1983_vm13 = vc.u32 %v4144_v26, %v4155_v23  ;;  %v1751_v28 = vshll.u32 %v3154_v11, %v3467_v49  ;;  %v1761_v12 = vshrl.u32 %v3153_v2, %v3495_v62 }
 0x15f   :  { %v2164_v35 = vxor.u32 2147483648, %v2163_v47  ;;  %v1752_v56 = vshrl.u32 %v3150_v58, %v3495_v62  ;;  %v1754_v48 = vshll.u32 %v3150_v58, %v3467_v49  ;;  %v1757_v32 = vshll.u32 %v3151_v60, %v3467_v49 }
 0x160   :  { %v1984_v31 = vadd.s32 1, %v1980_v50  ;;  %v1760_v1 = vshll.u32 %v3152_v63, %v3467_v49  ;;  %v1763_v51 = vshll.u32 %v3153_v2, %v3467_v49  ;;  %v1764_v9 = vshrl.u32 %v3155_v20, %v3495_v62 }
 0x161   :  { %v2165_v55 = vsel %vm2044_vm6, %v2164_v35, %v2163_v47  ;;  %v1742_v3 = vor.u32 8388608, %v1741_v21  ;;  %v4194_v57 = vor.u32 %v1755_v45, %v1754_v48  ;;  %v1759_v16 = vor.u32 %v1758_v27, %v1757_v32 }
 0x162   :  { %v4199_v0 = vsel %vm4140_vm14, %v3336_v42, %v2165_v55  ;;  %v1985_v49 = vsel %vm1983_vm13, %v1984_v31, %v1980_v50  ;;  %v1762_v61 = vor.u32 %v1761_v12, %v1760_v1  ;;  %v1765_v6 = vor.u32 %v1764_v9, %v1763_v51 }
 0x163   :  { %v2170_v29 = vmul.f32 %v4199_v0, %v4199_v0  ;;  %v2805_v15 = vadd.s32 3, %v2169_v59  ;;  %3011 = vmatmul.msk.f32.gmra.mxu0 %vm1351_vm10, %v4179_v40  ;;  %v1986_v19 = vadd.s32 %v1985_v49, %v1981_v7  ;;  %vm1769_vm15 = vcmp.lt.s32.totalorder %v3465_v10, 4 }
 0x164   :  { %3015 = vmatmul.msk.f32.gmra.mxu1 %vm1351_vm10, %v4192_v53  ;;  %v1753_v44 = vor.u32 %v1752_v56, %v1751_v28  ;;  %vm1766_vm0 = vcmp.lt.s32.totalorder %v3465_v10, 1  ;;  %vm1768_vm1 = vcmp.lt.s32.totalorder %v3465_v10, 3  ;;  %v1779_v52 = vsel %vm1769_vm15, %v1765_v6, 1326507024 }
 0x165   :  { %v2171_v25 = vmul.f32 -0.001358992, %v2170_v29  ;;  %v2178_v36 = vmul.f32 -0.00019511016, %v2170_v29  ;;  %v1987_v24 = vadd.s32 536870912, %v1986_v19  ;;  %v1778_v54 = vsel %vm1766_vm0, %v4194_v57, %v1759_v16 }
 0x166   :  { %v4218_v17 = vand.u32 3, %v2169_v59  ;;  %v1775_v13 = vsel %vm1769_vm15, %v1762_v61, 920167782  ;;  %v1780_v18 = vsel %vm1768_vm1, %v1762_v61, %v1779_v52  ;;  %v4224_v7 = vshll.u32 %v1742_v3, 8 }
 0x167   :  { %v2172_v47 = vadd.f32 0.041655596, %v2171_v25  ;;  %v2179_v21 = vadd.f32 0.008332121, %v2178_v36  ;;  %v4226_v45 = vshrl.u32 %v1987_v24, 30  ;;  %vm1767_vm2 = vcmp.lt.s32.totalorder %v3465_v10, 2 }
 0x168   :  { %v2806_v27 = vand.u32 3, %v2805_v15  ;;  %v1774_v59 = vsel %vm1766_vm0, %v1753_v44, %v4194_v57  ;;  %v1781_v50 = vsel %vm1767_vm2, %v1778_v54, %v1780_v18  ;;  %v1776_v56 = vsel %vm1768_vm1, %v1759_v16, %v1775_v13 }
 0x169   :  { %v2173_v28 = vmul.f32 %v2172_v47, %v2170_v29  ;;  %v2180_v12 = vmul.f32 %v2179_v21, %v2170_v29  ;;  %v1989_v35 = vshll.u32 %v4226_v45, 30  ;;  %v4238_v48 = vsub.s32 32, %v4147_v39 }
 0x16a   :  { %vm2191_vm4 = vcmp.eq.s32.totalorder %v4218_v17, 2  ;;  %v4242_v32 = vand.u32 65535, %v4224_v7  ;;  %v1786_v31 = vshrl.u32 %v1781_v50, 16  ;;  %v1785_v55 = vand.u32 65535, %v1781_v50 }
 0x16b   :  { %v2174_v1 = vadd.f32 -0.4999988, %v2173_v28  ;;  %v2181_v51 = vadd.f32 -0.16666654, %v2180_v12  ;;  %v4244_v9 = vsub.s32 %v1986_v19, %v1989_v35  ;;  %vm2808_vm3 = vcmp.eq.s32.totalorder %v2806_v27, 0 }
 0x16c   :  { %vm2188_vm9 = vcmp.eq.s32.totalorder %v4218_v17, 0  ;;  %v4249_v3 = vsel %vm1767_vm2, %v1774_v59, %v1776_v56  ;;  %v4252_v49 = vshrl.u32 %v4224_v7, 16  ;;  %v4255_v61 = vmul.u32 %v1786_v31, %v4242_v32 }
 0x16d   :  { %v2175_v6 = vmul.f32 %v2174_v1, %v2170_v29  ;;  %v2182_v15 = vmul.f32 %v2181_v51, %v2170_v29  ;;  %vm2807_vm5 = vcmp.lt.s32.totalorder %v2806_v27, 2  ;;  %vm2187_vm6 = vcmp.lt.s32.totalorder %v4218_v17, 2 }
 0x16e   :  { %vm1991_vm7 = vcmp.lt.s32.totalorder %v4244_v9, 0  ;;  %v1992_v19 = vsub.s32 0, %v4244_v9  ;;  %vm2185_vm11 = vweird.f32 %v3336_v42  ;;  %vm2811_vm8 = vcmp.eq.s32.totalorder %v2806_v27, 2 }
 0x16f   :  { %v1982_v52 = vadd.s32 %v4155_v23, %v4144_v26  ;;  %v1750_v25 = vshrl.u32 %v3154_v11, %v3495_v62  ;;  %v1771_v36 = vsel %vm1769_vm15, %v1759_v16, 2102212464  ;;  %v2176_v29 = vadd.f32 1.0, %v2175_v6 }
 0x170   :  { %v2183_v24 = vadd.f32 1.0, %v2182_v15  ;;  %v1993_v54 = vsel %vm1991_vm7, %v1992_v19, %v4244_v9  ;;  %v1789_v13 = vmul.u32 %v1785_v55, %v4252_v49  ;;  %vm1890_vm12 = vcmp.lt.s32.totalorder %v3400_v37, 0 }
 0x171   :  { %v1994_v18 = vclz %v1993_v54  ;;  %v1770_v47 = vsel %vm1766_vm0, %v1750_v25, %v1753_v44  ;;  %v1791_v26 = vshll.u32 %v4255_v61, 16  ;;  %v1808_v23 = vshrl.u32 %v4249_v3, 16 }
 0x172   :  { %v2184_v62 = vmul.f32 %v2183_v24, %v4199_v0  ;;  %v2192_v21 = vxor.u32 2147483648, %v2176_v29  ;;  %v1772_v16 = vsel %vm1768_vm1, %v4194_v57, %v1771_v36  ;;  %v1807_v59 = vand.u32 65535, %v4249_v3 }
 0x173   :  { %v3028_v50 = vadd.s32 4294967294, %v1994_v18  ;;  %v2012_v28 = vsub.s32 4, %v4226_v45  ;;  %v1787_v12 = vmul.u32 %v1785_v55, %v4242_v32  ;;  %v1790_v44 = vmul.u32 %v1786_v31, %v4252_v49 }
 0x174   :  { %v2189_v35 = vxor.u32 2147483648, %v2184_v62  ;;  %v2813_v56 = vsel %vm2811_vm8, %v2192_v21, %v2184_v62  ;;  %v2193_v0 = vsel %vm2191_vm4, %v2192_v21, %v2184_v62  ;;  %v1793_v1 = vshll.u32 %v1789_v13, 16 }
 0x175   :  { %vm3029_vm14 = vcmp.lt.s32.totalorder %v3028_v50, 0  ;;  %vm1795_vm13 = vc.u32 %v1787_v12, %v1791_v26  ;;  %v1797_v51 = vadd.s32 %v1791_v26, %v1787_v12  ;;  %v1810_v57 = vmul.u32 %v1808_v23, %v4242_v32 }
 0x176   :  { %v2810_v3 = vsel %vm2808_vm3, %v2176_v29, %v2189_v35  ;;  %v2190_v6 = vsel %vm2188_vm9, %v2176_v29, %v2189_v35  ;;  %v1997_v55 = vsel %vm3029_vm14, 0, %v3028_v50  ;;  %v1796_v31 = vsel %vm1795_vm13, 1, %v3149_v4 }
 0x177   :  { %v2814_v15 = vsel %vm2807_vm5, %v2810_v3, %v2813_v56  ;;  %v2194_v19 = vsel %vm2187_vm6, %v2190_v6, %v2193_v0  ;;  %v1998_v25 = vsub.s32 32, %v1997_v55  ;;  %v1999_v36 = vshll.u32 %v4244_v9, %v1997_v55 }
 0x178   :  { %v2815_v24 = vsel %vm2185_vm11, nan, %v2814_v15  ;;  %v2195_v54 = vsel %vm2185_vm11, nan, %v2194_v19  ;;  %v2002_v18 = vsub.s32 4294967266, %v1997_v55  ;;  %v1798_v26 = vadd.s32 %v1796_v31, %v1790_v44 }
 0x179   :  { %2828 = vmatpush.msrb.mxu3 %v2815_v24  ;;  %2857 = vmatpush.msrb.mxu0 %v2195_v54  ;;  %v2000_v29 = vshrl.u32 %v1982_v52, %v1998_v25  ;;  %vm1799_vm15 = vc.u32 %v1797_v51, %v1793_v1  ;;  %v1811_v27 = vmul.u32 %v1807_v59, %v4252_v49  ;;  %v1813_v62 = vshll.u32 %v1810_v57, 16 }
 0x17a   :  { %v2003_v17 = vadd.s32 127, %v2002_v18  ;;  %v2013_v9 = vsel %vm1890_vm12, %v2012_v28, %v4226_v45  ;;  %v1800_v21 = vsel %vm1799_vm15, 1, %v3149_v4  ;;  %v1809_v50 = vmul.u32 %v1807_v59, %v4242_v32 }
 0x17b   :  { %v2001_v42 = vor.u32 %v2000_v29, %v1999_v36  ;;  %v1792_v12 = vshrl.u32 %v4255_v61, 16  ;;  %v1802_v44 = vadd.s32 %v1800_v21, %v1798_v26  ;;  %v1812_v35 = vmul.u32 %v1808_v23, %v4252_v49 }
 0x17c   :  { %v2004_v52 = vshll.u32 %v2003_v17, 23  ;;  %v1815_v56 = vshll.u32 %v1811_v27, 16  ;;  %vm1817_vm0 = vc.u32 %v1809_v50, %v1813_v62  ;;  %v1819_v0 = vadd.s32 %v1813_v62, %v1809_v50 }
 0x17d   :  { %vm4308_vm1 = vcmp.le.f32.partialorder %v1888_v43, 0.7853982  ;;  %v1794_v45 = vshrl.u32 %v1789_v13, 16  ;;  %v1803_v28 = vadd.s32 %v1802_v44, %v1792_v12  ;;  %v1818_v32 = vsel %vm1817_vm0, 1, %v3149_v4 }
 0x17e   :  { %v2005_v59 = vor.u32 4788187, %v2004_v52  ;;  %v2015_v61 = vsel %vm4308_vm1, 0, %v2013_v9  ;;  %v1820_v51 = vadd.s32 %v1818_v32, %v1812_v35  ;;  %vm1821_vm4 = vc.u32 %v1819_v0, %v1815_v56 }
 0x17f   :  { %v1773_v49 = vsel %vm1767_vm2, %v1770_v47, %v1772_v16  ;;  %v4317_v23 = vadd.s32 %v1803_v28, %v1794_v45  ;;  %v1822_v43 = vsel %vm1821_vm4, 1, %v3149_v4  ;;  %v1580_v3 = vand.u32 2147483647, %v3559_v30 }
 0x180   :  { %v2006_v6 = vand.u32 2147483647, %v2005_v59  ;;  %v2008_v13 = vcvt.s32.f32 %v2001_v42  ;;  %v1814_v55 = vshrl.u32 %v1810_v57, 16  ;;  %v1824_v31 = vadd.s32 %v1822_v43, %v1820_v51 }
 0x181   :  { %v4322_v15 = vshrl.u32 %v3949_v33, 5  ;;  %v2650_v19 = vadd.s32 3, %v2015_v61  ;;  %v4324_v25 = vadd.s32 %v1819_v0, %v1815_v56  ;;  %v1816_v24 = vshrl.u32 %v1811_v27, 16 }
 0x182   :  { %v2009_v36 = vmul.f32 %v2008_v13, %v2006_v6  ;;  %v1825_v10 = vadd.s32 %v1824_v31, %v1814_v55  ;;  %v1827_v47 = vmul.u32 %v4224_v7, %v1773_v49  ;;  %v1587_v16 = vand.u32 8388607, %v1580_v3 }
 0x183   :  { %vm1829_vm2 = vc.u32 %v4317_v23, %v4324_v25  ;;  %v1601_v57 = vshrl.u32 %v3151_v60, %v4238_v48  ;;  %v1604_v33 = vshrl.u32 %v3152_v63, %v4238_v48  ;;  %v1606_v26 = vshll.u32 %v3152_v63, %v4147_v39 }
 0x184   :  { %v2010_v54 = vxor.u32 2147483648, %v2009_v36  ;;  %v1826_v18 = vadd.s32 %v1825_v10, %v1816_v24  ;;  %v1607_v7 = vshrl.u32 %v3153_v2, %v4238_v48  ;;  %v1598_v29 = vshrl.u32 %v3150_v58, %v4238_v48 }
 0x185   :  { %v1600_v27 = vshll.u32 %v3150_v58, %v4147_v39  ;;  %v1603_v62 = vshll.u32 %v3151_v60, %v4147_v39  ;;  %v1610_v17 = vshrl.u32 %v3155_v20, %v4238_v48  ;;  %v1609_v50 = vshll.u32 %v3153_v2, %v4147_v39 }
 0x186   :  { %v2011_v9 = vsel %vm1890_vm12, %v2010_v54, %v2009_v36  ;;  %v1830_v21 = vadd.s32 1, %v1826_v18  ;;  %v1608_v63 = vor.u32 %v1607_v7, %v1606_v26  ;;  %v1597_v58 = vshll.u32 %v3154_v11, %v4147_v39 }
 0x187   :  { %v2014_v42 = vsel %vm4308_vm1, %v3400_v37, %v2011_v9  ;;  %v4356_v12 = vor.u32 %v1601_v57, %v1600_v27  ;;  %v4358_v60 = vor.u32 %v1604_v33, %v1603_v62  ;;  %v1588_v35 = vor.u32 8388608, %v1587_v16 }
 0x188   :  { %v2016_v20 = vmul.f32 %v2014_v42, %v2014_v42  ;;  %v1831_v44 = vsel %vm1829_vm2, %v1830_v21, %v1826_v18  ;;  %v1611_v52 = vor.u32 %v1610_v17, %v1609_v50  ;;  %v4363_v2 = vor.u32 %v1598_v29, %v1597_v58 }
 0x189   :  { %v1832_v56 = vadd.s32 %v1831_v44, %v1827_v47  ;;  %vm1612_vm3 = vcmp.lt.s32.totalorder %v4322_v15, 1  ;;  %vm1615_vm9 = vcmp.lt.s32.totalorder %v4322_v15, 4  ;;  %vm1613_vm5 = vcmp.lt.s32.totalorder %v4322_v15, 2 }
 0x18a   :  { %v2017_v0 = vmul.f32 -0.001358992, %v2016_v20  ;;  %v2024_v39 = vmul.f32 -0.00019511016, %v2016_v20  ;;  %v1621_v1 = vsel %vm1615_vm9, %v1608_v63, 920167782  ;;  %v1624_v28 = vsel %vm1612_vm3, %v4356_v12, %v4358_v60 }
 0x18b   :  { %v1833_v45 = vadd.s32 536870912, %v1832_v56  ;;  %vm1614_vm6 = vcmp.lt.s32.totalorder %v4322_v15, 3  ;;  %v1625_v51 = vsel %vm1615_vm9, %v1611_v52, 1326507024  ;;  %v1620_v43 = vsel %vm1612_vm3, %v4363_v2, %v4356_v12 }
 0x18c   :  { %v2018_v32 = vadd.f32 0.041655596, %v2017_v0  ;;  %v2025_v59 = vadd.f32 0.008332121, %v2024_v39  ;;  %v1622_v6 = vsel %vm1614_vm6, %v4358_v60, %v1621_v1  ;;  %v1626_v13 = vsel %vm1614_vm6, %v1608_v63, %v1625_v51 }
 0x18d   :  { %v4377_v49 = vshrl.u32 %v1833_v45, 30  ;;  %v2032_v36 = vand.u32 3, %v2015_v61  ;;  %v1627_v24 = vsel %vm1613_vm5, %v1624_v28, %v1626_v13  ;;  %v4391_v47 = vshll.u32 %v1588_v35, 8 }
 0x18e   :  { %v2019_v55 = vmul.f32 %v2018_v32, %v2016_v20  ;;  %v2026_v31 = vmul.f32 %v2025_v59, %v2016_v20  ;;  %v4395_v33 = vsel %vm1613_vm5, %v1620_v43, %v1622_v6  ;;  %v2651_v54 = vand.u32 3, %v2650_v19 }
 0x18f   :  { %v1835_v10 = vshll.u32 %v4377_v49, 30  ;;  %v1632_v26 = vshrl.u32 %v1627_v24, 16  ;;  %vm2033_vm7 = vcmp.lt.s32.totalorder %v2032_v36, 2  ;;  %vm2034_vm11 = vcmp.eq.s32.totalorder %v2032_v36, 0 }
 0x190   :  { %v2020_v16 = vadd.f32 -0.4999988, %v2019_v55  ;;  %v2027_v57 = vadd.f32 -0.16666654, %v2026_v31  ;;  %vm2031_vm8 = vweird.f32 %v3400_v37  ;;  %v1629_v27 = vand.u32 65535, %v4391_v47 }
 0x191   :  { %v4397_v18 = vsub.s32 %v1832_v56, %v1835_v10  ;;  %v1653_v62 = vand.u32 65535, %v4395_v33  ;;  %v1631_v19 = vand.u32 65535, %v1627_v24  ;;  %v1654_v21 = vshrl.u32 %v4395_v33, 16 }
 0x192   :  { %v2021_v7 = vmul.f32 %v2020_v16, %v2016_v20  ;;  %v2028_v29 = vmul.f32 %v2027_v57, %v2016_v20  ;;  %vm2652_vm14 = vcmp.lt.s32.totalorder %v2651_v54, 2  ;;  %vm2037_vm13 = vcmp.eq.s32.totalorder %v2032_v36, 2 }
 0x193   :  { %vm1837_vm12 = vcmp.lt.s32.totalorder %v4397_v18, 0  ;;  %v1838_v61 = vsub.s32 0, %v4397_v18  ;;  %v1634_v50 = vmul.u32 %v1632_v26, %v1629_v27  ;;  %vm2653_vm15 = vcmp.eq.s32.totalorder %v2651_v54, 0 }
 0x194   :  { %v2022_v17 = vadd.f32 1.0, %v2021_v7  ;;  %v2029_v9 = vadd.f32 1.0, %v2028_v29  ;;  %vm2656_vm0 = vcmp.eq.s32.totalorder %v2651_v54, 2  ;;  %v1828_v35 = vadd.s32 %v4324_v25, %v4317_v23 }
 0x195   :  { %v1839_v63 = vsel %vm1837_vm12, %v1838_v61, %v4397_v18  ;;  %v1630_v52 = vshrl.u32 %v4391_v47, 16  ;;  %v1655_v56 = vmul.u32 %v1653_v62, %v1629_v27  ;;  %v1633_v1 = vmul.u32 %v1631_v19, %v1629_v27 }
 0x196   :  { %v2030_v58 = vmul.f32 %v2029_v9, %v2014_v42  ;;  %v2038_v20 = vxor.u32 2147483648, %v2022_v17  ;;  %v1840_v44 = vclz %v1839_v63  ;;  %v1656_v45 = vmul.u32 %v1654_v21, %v1629_v27 }
 0x197   :  { %v1635_v32 = vmul.u32 %v1631_v19, %v1630_v52  ;;  %v1636_v59 = vmul.u32 %v1632_v26, %v1630_v52  ;;  %v1637_v51 = vshll.u32 %v1634_v50, 16  ;;  %v1657_v10 = vmul.u32 %v1653_v62, %v1630_v52 }
 0x198   :  { %v2035_v0 = vxor.u32 2147483648, %v2030_v58  ;;  %v3025_v39 = vadd.s32 4294967294, %v1840_v44  ;;  %v2658_v28 = vsel %vm2656_vm0, %v2038_v20, %v2030_v58  ;;  %v2039_v6 = vsel %vm2037_vm13, %v2038_v20, %v2030_v58 }
 0x199   :  { %vm1641_vm4 = vc.u32 %v1633_v1, %v1637_v51  ;;  %v1639_v57 = vshll.u32 %v1635_v32, 16  ;;  %v1643_v54 = vadd.s32 %v1637_v51, %v1633_v1  ;;  %v1638_v36 = vshrl.u32 %v1634_v50, 16 }
 0x19a   :  { %v2655_v43 = vsel %vm2653_vm15, %v2022_v17, %v2035_v0  ;;  %v2036_v42 = vsel %vm2034_vm11, %v2022_v17, %v2035_v0  ;;  %vm3026_vm1 = vcmp.lt.s32.totalorder %v3025_v39, 0  ;;  %v1642_v33 = vsel %vm1641_vm4, 1, %v3149_v4 }
 0x19b   :  { %v2659_v13 = vsel %vm2652_vm14, %v2655_v43, %v2658_v28  ;;  %v2040_v23 = vsel %vm2033_vm7, %v2036_v42, %v2039_v6  ;;  %v1843_v25 = vsel %vm3026_vm1, 0, %v3025_v39  ;;  %v1644_v7 = vadd.s32 %v1642_v33, %v1636_v59 }
 0x19c   :  { %v2660_v55 = vsel %vm2031_vm8, nan, %v2659_v13  ;;  %v2041_v31 = vsel %vm2031_vm8, nan, %v2040_v23  ;;  %v1844_v24 = vsub.s32 32, %v1843_v25  ;;  %v1848_v16 = vsub.s32 4294967266, %v1843_v25 }
 0x19d   :  { %2829 = vmatpush.msrb.mxu3 %v2660_v55  ;;  %2858 = vmatpush.msrb.mxu0 %v2041_v31  ;;  %v1659_v29 = vshll.u32 %v1656_v45, 16  ;;  %v1845_v61 = vshll.u32 %v4397_v18, %v1843_v25  ;;  %vm1645_vm2 = vc.u32 %v1643_v54, %v1639_v57  ;;  %v1658_v17 = vmul.u32 %v1654_v21, %v1630_v52 }
 0x19e   :  { %v1846_v26 = vshrl.u32 %v1828_v35, %v1844_v24  ;;  %v1849_v27 = vadd.s32 127, %v1848_v16  ;;  %v1646_v37 = vsel %vm1645_vm2, 1, %v3149_v4  ;;  %v1661_v9 = vshll.u32 %v1657_v10, 16 }
 0x19f   :  { %vm1663_vm7 = vc.u32 %v1655_v56, %v1659_v29  ;;  %v1665_v62 = vadd.s32 %v1659_v29, %v1655_v56  ;;  %v1648_v58 = vadd.s32 %v1646_v37, %v1644_v7  ;;  %v1596_v50 = vshrl.u32 %v3154_v11, %v4238_v48 }
 0x1a0   :  { %v1847_v19 = vor.u32 %v1846_v26, %v1845_v61  ;;  %v1850_v63 = vshll.u32 %v1849_v27, 23  ;;  %v1664_v20 = vsel %vm1663_vm7, 1, %v3149_v4  ;;  %v1617_v18 = vsel %vm1615_vm9, %v4358_v60, 2102212464 }
 0x1a1   :  { %v1666_v44 = vadd.s32 %v1664_v20, %v1658_v17  ;;  %vm1667_vm11 = vc.u32 %v1665_v62, %v1661_v9  ;;  %v1640_v35 = vshrl.u32 %v1635_v32, 16  ;;  %v1649_v52 = vadd.s32 %v1648_v58, %v1638_v36 }
 0x1a2   :  { %v1851_v21 = vor.u32 4788187, %v1850_v63  ;;  %v1668_v0 = vsel %vm1667_vm11, 1, %v3149_v4  ;;  %v1616_v56 = vsel %vm1612_vm3, %v1596_v50, %v4363_v2  ;;  %v1660_v39 = vshrl.u32 %v1656_v45, 16 }
 0x1a3   :  { %v1670_v1 = vadd.s32 %v1668_v0, %v1666_v44  ;;  %v1854_v59 = vcvt.s32.f32 %v1847_v19  ;;  %v1618_v11 = vsel %vm1614_vm6, %v4356_v12, %v1617_v18  ;;  %v4433_v48 = vadd.s32 %v1649_v52, %v1640_v35 }
 0x1a4   :  { %v1852_v28 = vand.u32 2147483647, %v1851_v21  ;;  %v1662_v60 = vshrl.u32 %v1657_v10, 16  ;;  %v1669_v43 = vadd.s32 %v1665_v62, %v1661_v9  ;;  %v1619_v4 = vsel %vm1613_vm5, %v1616_v56, %v1618_v11 }
 0x1a5   :  { %v1671_v51 = vadd.s32 %v1670_v1, %v1660_v39  ;;  %vm1736_vm9 = vcmp.lt.s32.totalorder %v3329_v38, 0  ;;  %vm1735_vm8 = vcmp.le.f32.partialorder %v1734_v41, 0.7853982  ;;  %v1858_v45 = vsub.s32 4, %v4377_v49 }
 0x1a6   :  { %v1855_v32 = vmul.f32 %v1854_v59, %v1852_v28  ;;  %vm1675_vm3 = vc.u32 %v4433_v48, %v1669_v43  ;;  %v1673_v13 = vmul.u32 %v4391_v47, %v1619_v4  ;;  %vm1877_vm6 = vweird.f32 %v3329_v38 }
 0x1a7   :  { %v1672_v42 = vadd.s32 %v1671_v51, %v1662_v60  ;;  %v1859_v31 = vsel %vm1736_vm9, %v1858_v45, %v4377_v49  ;;  %v1674_v59 = vadd.s32 %v1669_v43, %v4433_v48  ;;  %v49_v48 = vld [vmem:[%s4533_s5 + $0x8] sm:$0xff]  ;;  %vm1582_vm2 = vcmp.lt.s32.totalorder %v3559_v30, 0 }
 0x1a8   :  { %v1856_v6 = vxor.u32 2147483648, %v1855_v32  ;;  %v1861_v41 = vsel %vm1735_vm8, 0, %v1859_v31  ;;  %1441 = vperm.xlu0 %3089, %v49_v48   ;;  %vm1581_vm7 = vcmp.le.f32.partialorder %v1580_v3, 0.7853982 }
 0x1a9   :  { %v1676_v2 = vadd.s32 1, %v1672_v42  ;;  %v2495_v61 = vadd.s32 3, %v1861_v41  ;;  %v1878_v9 = vand.u32 3, %v1861_v41 }
 0x1aa   :  { %v1857_v12 = vsel %vm1736_vm9, %v1856_v6, %v1855_v32 }
 0x1ab   :  { %v1860_v23 = vsel %vm1735_vm8, %v3329_v38, %v1857_v12  ;;  %v1677_v25 = vsel %vm1675_vm3, %v1676_v2, %v1672_v42  ;;  %v2496_v63 = vand.u32 3, %v2495_v61  ;;  %vm1879_vm12 = vcmp.lt.s32.totalorder %v1878_v9, 2 }
 0x1ac   :  { %v1862_v15 = vmul.f32 %v1860_v23, %v1860_v23  ;;  %v1678_v55 = vadd.s32 %v1677_v25, %v1673_v13  ;;  %vm1880_vm13 = vcmp.eq.s32.totalorder %v1878_v9, 0  ;;  %vm1883_vm15 = vcmp.eq.s32.totalorder %v1878_v9, 2 }
 0x1ad   :  { %vm2501_vm14 = vcmp.eq.s32.totalorder %v2496_v63, 2  ;;  %vm2497_vm0 = vcmp.lt.s32.totalorder %v2496_v63, 2  ;;  %vm2498_vm1 = vcmp.eq.s32.totalorder %v2496_v63, 0 }
 0x1ae   :  { %v1863_v24 = vmul.f32 -0.001358992, %v1862_v15  ;;  %v1870_v10 = vmul.f32 -0.00019511016, %v1862_v15  ;;  %v1679_v16 = vadd.s32 536870912, %v1678_v55 }
 0x1b0   :  { %v1864_v57 = vadd.f32 0.041655596, %v1863_v24  ;;  %v1871_v33 = vadd.f32 0.008332121, %v1870_v10  ;;  %v4445_v54 = vshrl.u32 %v1679_v16, 30 }
 0x1b2   :  { %v1865_v26 = vmul.f32 %v1864_v57, %v1862_v15  ;;  %v1872_v36 = vmul.f32 %v1871_v33, %v1862_v15  ;;  %v1681_v7 = vshll.u32 %v4445_v54, 30 }
 0x1b4   :  { %v1866_v47 = vadd.f32 -0.4999988, %v1865_v26  ;;  %v1873_v29 = vadd.f32 -0.16666654, %v1872_v36  ;;  %v1682_v27 = vsub.s32 %v1678_v55, %v1681_v7 }
 0x1b6   :  { %v1867_v17 = vmul.f32 %v1866_v47, %v1862_v15  ;;  %v1874_v37 = vmul.f32 %v1873_v29, %v1862_v15  ;;  %vm1683_vm5 = vcmp.lt.s32.totalorder %v1682_v27, 0  ;;  %v1684_v49 = vsub.s32 0, %v1682_v27 }
 0x1b7   :  { %v1704_v15 = vsub.s32 4, %v4445_v54 }
 0x1b8   :  { %v1868_v62 = vadd.f32 1.0, %v1867_v17  ;;  %v1875_v19 = vadd.f32 1.0, %v1874_v37  ;;  %v1685_v58 = vsel %vm1683_vm5, %v1684_v49, %v1682_v27 }
 0x1b9   :  { %v1686_v20 = vclz %v1685_v58  ;;  %v1705_v24 = vsel %vm1582_vm2, %v1704_v15, %v4445_v54  ;;  %v50_v54 = vld [vmem:[%s4533_s5 + $0x10] sm:$0xff] }
 0x1ba   :  { %v1876_v50 = vmul.f32 %v1875_v19, %v1860_v23  ;;  %v1884_v18 = vxor.u32 2147483648, %v1868_v62  ;;  %v1707_v41 = vsel %vm1581_vm7, 0, %v1705_v24  ;;  %v56_v19 = vld [vmem:[%s4535_s7] sm:$0xff]  ;;  %1446 = vperm.xlu2 %3088, %v50_v54  }
 0x1bb   :  { %v3022_v44 = vadd.s32 4294967294, %v1686_v20  ;;  %v2340_v29 = vadd.s32 3, %v1707_v41  ;;  %1464 = vperm.xlu0 %3089, %v56_v19  }
 0x1bc   :  { %v1881_v21 = vxor.u32 2147483648, %v1876_v50  ;;  %v2503_v35 = vsel %vm2501_vm14, %v1884_v18, %v1876_v50  ;;  %v1885_v56 = vsel %vm1883_vm15, %v1884_v18, %v1876_v50  ;;  %v4469_v18 = vpop.permute.xlu1 %1451 }
 0x1bd   :  { %vm3023_vm4 = vcmp.lt.s32.totalorder %v3022_v44, 0  ;;  %v2341_v49 = vand.u32 3, %v2340_v29 }
 0x1be   :  { %v2500_v52 = vsel %vm2498_vm1, %v1868_v62, %v1881_v21  ;;  %v1882_v0 = vsel %vm1880_vm13, %v1868_v62, %v1881_v21  ;;  %v1689_v39 = vsel %vm3023_vm4, 0, %v3022_v44 }
 0x1bf   :  { %v2504_v1 = vsel %vm2497_vm0, %v2500_v52, %v2503_v35  ;;  %v1886_v28 = vsel %vm1879_vm12, %v1882_v0, %v1885_v56  ;;  %v1690_v11 = vsub.s32 32, %v1689_v39  ;;  %v1694_v32 = vsub.s32 4294967266, %v1689_v39 }
 0x1c0   :  { %v2505_v60 = vsel %vm1877_vm6, nan, %v2504_v1  ;;  %v1887_v51 = vsel %vm1877_vm6, nan, %v1886_v28  ;;  %v1691_v42 = vshll.u32 %v1682_v27, %v1689_v39  ;;  %v1724_v27 = vand.u32 3, %v1707_v41 }
 0x1c1   :  { %2830 = vmatpush.msrb.mxu3 %v2505_v60  ;;  %2859 = vmatpush.msrb.mxu0 %v1887_v51  ;;  %v1692_v4 = vshrl.u32 %v1674_v59, %v1690_v11  ;;  %v1695_v6 = vadd.s32 127, %v1694_v32  ;;  %vm2346_vm3 = vcmp.eq.s32.totalorder %v2341_v49, 2  ;;  %vm2342_vm8 = vcmp.lt.s32.totalorder %v2341_v49, 2  ;;  %v59_v59 = vld [vmem:[%s4535_s7 + $0x18] sm:$0xff]  ;;  %v57_v11 = vld [vmem:[%s4535_s7 + $0x8] sm:$0xff] }
 0x1c2   :  { %vm1725_vm11 = vcmp.lt.s32.totalorder %v1724_v27, 2  ;;  %vm1726_vm9 = vcmp.eq.s32.totalorder %v1724_v27, 0  ;;  %vm2343_vm5 = vcmp.eq.s32.totalorder %v2341_v49, 0  ;;  %vm1729_vm6 = vcmp.eq.s32.totalorder %v1724_v27, 2  ;;  %1479 = vperm.xlu2 %3088, %v59_v59  }
 0x1c3   :  { %v1693_v2 = vor.u32 %v1692_v4, %v1691_v42  ;;  %v1696_v12 = vshll.u32 %v1695_v6, 23  ;;  %vm1723_vm12 = vweird.f32 %v3559_v30 }
 0x1c5   :  { %v1697_v45 = vor.u32 4788187, %v1696_v12  ;;  %v1700_v13 = vcvt.s32.f32 %v1693_v2 }
 0x1c7   :  { %v1698_v43 = vand.u32 2147483647, %v1697_v45 }
 0x1c9   :  { %v1701_v23 = vmul.f32 %v1700_v13, %v1698_v43  ;;  %v52_v43 = vld [vmem:[%s4534_s6] sm:$0xff]  ;;  %v53_v13 = vld [vmem:[%s4534_s6 + $0x8] sm:$0xff] }
 0x1ca   :  { %1469 = vperm.xlu2 %3088, %v57_v11  }
 0x1cb   :  { %v1702_v25 = vxor.u32 2147483648, %v1701_v23 }
 0x1cd   :  { %v1703_v38 = vsel %vm1582_vm2, %v1702_v25, %v1701_v23  ;;  %v54_v23 = vld [vmem:[%s4534_s6 + $0x10] sm:$0xff] }
 0x1ce   :  { %v1706_v55 = vsel %vm1581_vm7, %v3559_v30, %v1703_v38  ;;  %v55_v38 = vld [vmem:[%s4534_s6 + $0x18] sm:$0xff] }
 0x1cf   :  { %v1708_v31 = vmul.f32 %v1706_v55, %v1706_v55 }
 0x1d1   :  { %v1709_v10 = vmul.f32 -0.001358992, %v1708_v31  ;;  %v1716_v16 = vmul.f32 -0.00019511016, %v1708_v31 }
 0x1d3   :  { %v1710_v57 = vadd.f32 0.041655596, %v1709_v10  ;;  %v1717_v33 = vadd.f32 0.008332121, %v1716_v16 }
 0x1d5   :  { %v1711_v26 = vmul.f32 %v1710_v57, %v1708_v31  ;;  %v1718_v36 = vmul.f32 %v1717_v33, %v1708_v31 }
 0x1d6   :  { %v1390_v63 = vpop.f32.mrf.mxu2 }
 0x1d7   :  { %v1712_v7 = vadd.f32 -0.4999988, %v1711_v26  ;;  %v1719_v47 = vadd.f32 -0.16666654, %v1718_v36  ;;  %v1431_v58 = vpop.f32.mrf.mxu3 }
 0x1d8   :  { %v1432_v50 = vadd.f32 %v1431_v58, %v1390_v63 }
 0x1d9   :  { %v1713_v61 = vmul.f32 %v1712_v7, %v1708_v31  ;;  %v1720_v3 = vmul.f32 %v1719_v47, %v1708_v31 }
 0x1da   :  { %v1457_v0 = vadd.f32 %v4469_v18, %v1432_v50 }
 0x1db   :  { %v1714_v17 = vadd.f32 1.0, %v1713_v61  ;;  %v1721_v37 = vadd.f32 1.0, %v1720_v3 }
 0x1dc   :  { %3090 = vtanh.f32 %v1457_v0 }
 0x1dd   :  { %v1722_v9 = vmul.f32 %v1721_v37, %v1706_v55  ;;  %v1730_v62 = vxor.u32 2147483648, %v1714_v17 }
 0x1df   :  { %v1727_v20 = vxor.u32 2147483648, %v1722_v9  ;;  %v2348_v44 = vsel %vm2346_vm3, %v1730_v62, %v1722_v9  ;;  %v1731_v52 = vsel %vm1729_vm6, %v1730_v62, %v1722_v9 }
 0x1e1   :  { %v2345_v21 = vsel %vm2343_vm5, %v1714_v17, %v1727_v20  ;;  %v1728_v35 = vsel %vm1726_vm9, %v1714_v17, %v1727_v20 }
 0x1e2   :  { %v2349_v56 = vsel %vm2342_vm8, %v2345_v21, %v2348_v44  ;;  %v1732_v39 = vsel %vm1725_vm11, %v1728_v35, %v1731_v52  ;;  %v3091_v30 = vpop.eup %3090 }
 0x1e3   :  { %v2350_v1 = vsel %vm1723_vm12, nan, %v2349_v56  ;;  %v1733_v28 = vsel %vm1723_vm12, nan, %v1732_v39  ;;  %1506 = vmatpush.msrb.mxu2 %v3091_v30 }
 0x1e4   :  { %2831 = vmatpush.msrb.mxu3 %v2350_v1  ;;  %2860 = vmatpush.msrb.mxu0 %v1733_v28  ;;  %v1527_v28 = vld [vmem:[%s4536_s8] sm:$0xff] }
 0x1e5   :  { %3045 = vmatmul.msk.f32.vlgmr.msrb.gmra.mxu3 %vm1351_vm10, %v4077_v5  ;;  %3049 = vmatmul.msk.f32.vlgmr.msrb.gmra.mxu0 %vm1351_vm10, %v4090_v46  ;;  %v1381_v5 = vpop.f32.mrf.mxu0  ;;  %v1422_v46 = vpop.f32.mrf.mxu1 }
 0x1e6   :  { %v1423_v42 = vadd.f32 %v1422_v46, %v1381_v5 }
 0x1ed   :  { %3046 = vmatmul.msk.f32.gmra.mxu3 %vm1351_vm10, %v4123_v34  ;;  %3050 = vmatmul.msk.f32.gmra.mxu0 %vm1351_vm10, %v4132_v22  ;;  %v1384_v60 = vpop.f32.mrf.mxu0  ;;  %v1425_v34 = vpop.f32.mrf.mxu1 }
 0x1ee   :  { %v1426_v22 = vadd.f32 %v1425_v34, %v1384_v60 }
 0x1f5   :  { %3047 = vmatmul.msk.f32.gmra.mxu3 %vm1351_vm10, %v4179_v40  ;;  %3051 = vmatmul.msk.f32.gmra.mxu0 %vm1351_vm10, %v4192_v53  ;;  %v1387_v51 = vpop.f32.mrf.mxu0  ;;  %v1428_v32 = vpop.f32.mrf.mxu1 }
 0x1f6   :  { %v1429_v4 = vadd.f32 %v1428_v32, %v1387_v51  ;;  %v1437_v53 = vpop.permute.xlu1 %1436 }
 0x1f7   :  { %v1454_v45 = vadd.f32 %v1437_v53, %v1423_v42 }
 0x1fd   :  { %3048 = vmatmul.msk.f32.gmra.mxu3 %vm1351_vm10, %v4082_v8  ;;  %3052 = vmatmul.msk.f32.gmra.mxu0 %vm1351_vm10, %v4095_v14 }
 0x1fe   :  { %v1475_v19 = vpop.permute.xlu1 %1474 }
 0x214   :  { %v1447_v6 = vpop.permute.xlu2 %1446 }
 0x215   :  { %v1456_v2 = vadd.f32 %v1447_v6, %v1429_v4 }
 0x217   :  { %3092 = vtanh.f32 %v1456_v2  ;;  %v2965_v2 = vpop.permute.xlu1 %2964 }
 0x21a   :  { %v1442_v40 = vpop.permute.xlu0 %1441 }
 0x21b   :  { %v1455_v12 = vadd.f32 %v1442_v40, %v1426_v22  ;;  %v2915_v22 = vld [vmem:[%s4537_s9] sm:$0xff] }
 0x21c   :  { %v1480_v62 = vpop.permute.xlu2 %1479 }
 0x21d   :  { %3094 = vtanh.f32 %v1455_v12  ;;  %v3093_v8 = vpop.eup %3092 }
 0x21e   :  { %3096 = vtanh.f32 %v1454_v45  ;;  %1507 = vmatpush.msrb.mxu2 %v3093_v8 }
 0x223   :  { %v3095_v14 = vpop.eup %3094 }
 0x224   :  { %1508 = vmatpush.msrb.mxu2 %v3095_v14  ;;  %v3097_v48 = vpop.eup %3096  ;;  %v1470_v50 = vpop.permute.xlu2 %1469 }
 0x226   :  { %1509 = vmatpush.msrb.mxu2 %v3097_v48 }
 0x227   :  { %3017 = vmatmul.msk.f32.vlgmr.msrb.gmra.mxu2 %vm1351_vm10, %v52_v43 }
 0x22d   :  { %v1465_v44 = vpop.permute.xlu0 %1464 }
 0x22f   :  { %3018 = vmatmul.msk.f32.gmra.mxu2 %vm1351_vm10, %v53_v13 }
 0x237   :  { %3019 = vmatmul.msk.f32.gmra.mxu2 %vm1351_vm10, %v54_v23 }
 0x23f   :  { %3020 = vmatmul.msk.f32.gmra.mxu2 %vm1351_vm10, %v55_v38 }
 0x262   :  { %v2862_v25 = vpop.f32.mrf.mxu0 }
 0x268   :  { %v2833_v15 = vpop.f32.mrf.mxu3 }
 0x269   :  { %v2863_v36 = vadd.f32 %v2862_v25, %v2833_v15 }
 0x26a   :  { %v2865_v55 = vpop.f32.mrf.mxu0 }
 0x26b   :  { %v2874_v61 = vadd.f32 %v2863_v36, %v1437_v53 }
 0x270   :  { %v2836_v31 = vpop.f32.mrf.mxu3 }
 0x271   :  { %v2866_v41 = vadd.f32 %v2865_v55, %v2836_v31 }
 0x272   :  { %v2868_v24 = vpop.f32.mrf.mxu0 }
 0x273   :  { %v2875_v29 = vadd.f32 %v2866_v41, %v1442_v40 }
 0x278   :  { %v2839_v10 = vpop.f32.mrf.mxu3 }
 0x279   :  { %v2869_v57 = vadd.f32 %v2868_v24, %v2839_v10 }
 0x27a   :  { %v2871_v16 = vpop.f32.mrf.mxu0 }
 0x27b   :  { %v2876_v7 = vadd.f32 %v2869_v57, %v1447_v6 }
 0x280   :  { %v2842_v33 = vpop.f32.mrf.mxu3 }
 0x281   :  { %v2872_v26 = vadd.f32 %v2871_v16, %v2842_v33 }
 0x283   :  { %v2877_v47 = vadd.f32 %v2872_v26, %v4469_v18 }
 0x285   :  { %3098 = vtanh.f32 %v2877_v47 }
 0x286   :  { %3100 = vtanh.f32 %v2876_v7 }
 0x287   :  { %3102 = vtanh.f32 %v2875_v29 }
 0x288   :  { %3104 = vtanh.f32 %v2874_v61 }
 0x28b   :  { %v3099_v3 = vpop.eup %3098 }
 0x28c   :  { %2894 = vmatpush.msrb.mxu1 %v3099_v3  ;;  %v3101_v27 = vpop.eup %3100 }
 0x28d   :  { %v3103_v17 = vpop.eup %3102 }
 0x28e   :  { %2895 = vmatpush.msrb.mxu1 %v3101_v27  ;;  %v3105_v37 = vpop.eup %3104 }
 0x290   :  { %2896 = vmatpush.msrb.mxu1 %v3103_v17 }
 0x292   :  { %2897 = vmatpush.msrb.mxu1 %v3105_v37 }
 0x293   :  { %3053 = vmatmul.msk.f32.vlgmr.msrb.gmra.mxu1 %vm1351_vm10, %v52_v43 }
 0x29b   :  { %3054 = vmatmul.msk.f32.gmra.mxu1 %vm1351_vm10, %v53_v13 }
 0x2a3   :  { %3055 = vmatmul.msk.f32.gmra.mxu1 %vm1351_vm10, %v54_v23 }
 0x2aa   :  { %v1511_v49 = vpop.f32.mrf.mxu2 }
 0x2ab   :  { %3056 = vmatmul.msk.f32.gmra.mxu1 %vm1351_vm10, %v55_v38  ;;  %v1512_v21 = vadd.f32 %v1511_v49, %v1465_v44 }
 0x2b2   :  { %v1514_v9 = vpop.f32.mrf.mxu2 }
 0x2b3   :  { %v1515_v18 = vadd.f32 %v1514_v9, %v1470_v50 }
 0x2ba   :  { %v1517_v54 = vpop.f32.mrf.mxu2 }
 0x2bb   :  { %v1518_v58 = vadd.f32 %v1517_v54, %v1475_v19 }
 0x2c2   :  { %v1520_v63 = vpop.f32.mrf.mxu2 }
 0x2c3   :  { %v1521_v20 = vadd.f32 %v1520_v63, %v1480_v62 }
 0x2c5   :  { %3106 = vtanh.f32 %v1521_v20 }
 0x2c6   :  { %3108 = vtanh.f32 %v1518_v58 }
 0x2c7   :  { %3110 = vtanh.f32 %v1515_v18 }
 0x2c8   :  { %3112 = vtanh.f32 %v1512_v21 }
 0x2cb   :  { %v3107_v35 = vpop.eup %3106 }
 0x2cc   :  { %2954 = vmatpush.msra.mxu3 %v3107_v35  ;;  %v3109_v52 = vpop.eup %3108 }
 0x2cd   :  { %v3111_v0 = vpop.eup %3110 }
 0x2ce   :  { %2955 = vmatpush.msra.mxu3 %v3109_v52  ;;  %v3113_v56 = vpop.eup %3112 }
 0x2d0   :  { %2956 = vmatpush.msra.mxu3 %v3111_v0 }
 0x2d2   :  { %2957 = vmatpush.msra.mxu3 %v3113_v56 }
 0x2d3   :  { %3058 = vmatmul.msk.f32.vlgmr.msra.gmra.mxu3 %vm1351_vm10, %v1527_v28 }
 0x310   :  { %v2899_v39 = vpop.f32.mrf.mxu1 }
 0x311   :  { %v2900_v60 = vadd.f32 %v2899_v39, %v1465_v44 }
 0x318   :  { %v2902_v1 = vpop.f32.mrf.mxu1 }
 0x319   :  { %v2903_v46 = vadd.f32 %v2902_v1, %v1470_v50 }
 0x320   :  { %v2905_v59 = vpop.f32.mrf.mxu1 }
 0x321   :  { %v2906_v11 = vadd.f32 %v2905_v59, %v1475_v19 }
 0x328   :  { %v2908_v30 = vpop.f32.mrf.mxu1 }
 0x329   :  { %v2909_v5 = vadd.f32 %v2908_v30, %v1480_v62 }
 0x32b   :  { %3114 = vtanh.f32 %v2909_v5 }
 0x32c   :  { %3116 = vtanh.f32 %v2906_v11 }
 0x32d   :  { %3118 = vtanh.f32 %v2903_v46 }
 0x32e   :  { %3120 = vtanh.f32 %v2900_v60 }
 0x331   :  { %v3115_v34 = vpop.eup %3114 }
 0x332   :  { %2931 = vmatpush.msra.mxu2 %v3115_v34  ;;  %v3117_v51 = vpop.eup %3116 }
 0x333   :  { %v3119_v32 = vpop.eup %3118 }
 0x334   :  { %2932 = vmatpush.msra.mxu2 %v3117_v51  ;;  %v3121_v4 = vpop.eup %3120 }
 0x336   :  { %2933 = vmatpush.msra.mxu2 %v3119_v32 }
 0x338   :  { %2934 = vmatpush.msra.mxu2 %v3121_v4 }
 0x339   :  { %3057 = vmatmul.msk.f32.vlgmr.msra.gmra.mxu2 %vm1351_vm10, %v2915_v22 }
 0x356   :  { %v2959_v42 = vpop.f32.mrf.mxu3 }
 0x3bc   :  { %v2936_v6 = vpop.f32.mrf.mxu2 }
 0x3bd   :  { %v2960_v40 = vadd.f32 %v2959_v42, %v2936_v6 }
 0x3bf   :  { %v2967_v12 = vadd.f32 %v2965_v2, %v2960_v40 }
 0x3c1   :  { %2968 = vst [vmem:[#allocation2] sm:$0xff] %v2967_v12 }
 0x3c2   :  { %2979 = dma.vmem_to_hbm [thread:$0]  %s2975_s30, 128, %s2977_s13, [#allocation3]  }
 0x3c3   :  { %3146 = dma.done.wait [#allocation3], 128  }
 0x3c4   :  { %3147 = vsyncadd [#allocation3], 4294967168 }
 0x3c5   :  { %2984 = vsyncpa [#allocation3], 1 }

</bundles_post_ra>
